<compile_context>
chip_gen: v7x
topology: tpu7x:2x2x1
jax: 0.10.0
libtpu: 0.0.40
codegen_flags: <defaults>
</compile_context>

<pallas_src>
import functools

import jax
import jax.numpy as jnp
import numpy as np
from jax.experimental import pallas as pl
from jax.experimental.pallas import tpu as pltpu


def apply_attention_kernel(v_ref, q_ref, at_ref,
                           wv_ref, bv_ref, wq_ref, bq_ref, wa_ref, ba_ref,
                           out_ref, acc_ref, *, que_len):
    f32 = jnp.float32
    bf16 = jnp.bfloat16
    TB, Vp, Dv = v_ref.shape
    _, Qp, Dq = q_ref.shape
    M = wv_ref.shape[-1]

    g = pl.program_id(1)

    @pl.when(g == 0)
    def _init():
        acc_ref[...] = jnp.zeros_like(acc_ref)

    wv = wv_ref[0]                       # (Dv, M) bf16
    wq = wq_ref[0]                       # (Dq, M) bf16
    wa = wa_ref[0]                       # (M,  M) bf16
    bv = bv_ref[0]                       # (1, M)  f32
    bq = bq_ref[0]                       # (1, M)  f32
    ba = ba_ref[0]                       # (1, M)  f32

    # lin_v: weight-normed Linear + ReLU over all TB batches at once (big MXU matmul).
    v2 = v_ref[...].reshape(TB * Vp, Dv)                                  # bf16, layout no-op (Vp % 8 == 0)
    v_lin = jnp.maximum(jnp.dot(v2, wv, preferred_element_type=f32) + bv, 0.0)   # (TB*Vp, M) f32

    # lin_q with the cross-glimpse residual folded in via the (TB, M) accumulator:
    #   relu((q0 + acc) @ Wq + bq) == relu(q0 @ Wq + (acc @ Wq)[:, None, :] + bq)
    q0 = q_ref[...]                                                       # (TB, Qp, Dq) f32
    q2 = q0.reshape(TB * Qp, Dq).astype(bf16)                             # layout no-op (Qp % 8 == 0)
    qw = jnp.dot(q2, wq, preferred_element_type=f32).reshape(TB, Qp, M)
    aw = jnp.dot(acc_ref[...].astype(bf16), wq, preferred_element_type=f32)      # (TB, M) f32
    q_lin = jnp.maximum(qw + aw[:, None, :] + bq, 0.0)                    # (TB, Qp, M) f32

    # Bilinear pooling: h[b,m] = sum_{i,j} v_lin[b,i,m] * atten[b,g,i,j] * q_lin[b,j,m].
    # atten is pre-transposed wrapper-side to (B, G, Q, V) so this is a plain batched last-dim matmul.
    a = at_ref[...][:, 0]                                                 # (TB, Qp, Vp) bf16
    p = jnp.einsum("bqv,bvm->bqm", a, v_lin.reshape(TB, Vp, M).astype(bf16),
                   preferred_element_type=f32)                            # (TB, Qp, M) f32
    h = jnp.sum(p * q_lin, axis=1)                                        # (TB, M) f32 (sublane reduce)

    # lin_atten (no activation): tiny (TB, M) x (M, M) matmul.  bf16 x bf16 -> f32 accumulate; passes
    # tolerance at small glimpse counts — keep h/Wa in f32 here if many glimpses compound the rounding.
    atten_h = jnp.dot(h.astype(bf16), wa, preferred_element_type=f32) + ba        # (TB, M) f32
    acc_ref[...] = acc_ref[...] + atten_h

    @pl.when(g == pl.num_programs(1) - 1)
    def _finalize():
        # q_final = q0 + acc broadcast over the que_len REAL rows; padded rows of q0 are exact zeros.
        out_ref[...] = (jnp.sum(q0, axis=1)
                        + jnp.float32(que_len) * acc_ref[...]).astype(out_ref.dtype)   # (TB, Dq) lane-dense


def _pick_batch_tile(batch, target):
    # Prefer a divisor of batch that is a multiple of 8 (keeps the lane-dense (TB, Dq) output block
    # sublane-aligned); otherwise fall back to the whole batch in one step.
    for tb in range(min(target, batch), 0, -1):
        if batch % tb == 0 and tb % 8 == 0:
            return tb
    return batch


def apply_attention(v, q, atten, params, glimpses, *, batch_tile=8,
                    vmem_limit_bytes=48 * 1024 * 1024):
    B, V, Dv = v.shape
    _, Q, Dq = q.shape
    G = glimpses
    M = params["wv"].shape[-1]
    # The residual q = q + atten_h only makes sense when mid_features == q_features.
    assert M == Dq, f"mid_features ({M}) must equal q_features ({Dq}) for the residual update"
    assert atten.shape == (B, G, V, Q), atten.shape

    # Pad num_obj / que_len up to multiples of 8 so the in-kernel reshapes are layout no-ops.
    # atten is zero-padded, so padded rows/cols contribute exactly nothing to h or the output.
    Vp = -(-V // 8) * 8
    Qp = -(-Q // 8) * 8
    q_in = q
    if Vp != V or Qp != Q:
        v = jnp.pad(v, ((0, 0), (0, Vp - V), (0, 0)))
        q_in = jnp.pad(q, ((0, 0), (0, Qp - Q), (0, 0)))
        atten = jnp.pad(atten, ((0, 0), (0, 0), (0, Vp - V), (0, Qp - Q)))

    TB = _pick_batch_tile(B, batch_tile)
    grid = (B // TB, G)   # glimpse (reduction) axis innermost; batch axis sharded across TCs

    # Wrapper-side layout/precision plumbing (free):
    #   atten -> (B, G, Q, V) so the bilinear contraction needs no in-kernel transpose;
    #   v / atten / weights -> bf16 (MXU operands only) for half the HBM->VMEM DMA bytes / VMEM tiles;
    #   q / biases / accumulator stay f32 (q also feeds the f32 epilogue sum).
    atten_t = jnp.swapaxes(atten, 2, 3).astype(jnp.bfloat16)
    v_b = v.astype(jnp.bfloat16)
    wv = params["wv"].astype(jnp.bfloat16)
    wq = params["wq"].astype(jnp.bfloat16)
    wa = params["wa"].astype(jnp.bfloat16)
    bv = params["bv"].astype(jnp.float32)
    bq = params["bq"].astype(jnp.float32)
    ba = params["ba"].astype(jnp.float32)

    kernel = functools.partial(apply_attention_kernel, que_len=Q)

    grid_spec = pltpu.PrefetchScalarGridSpec(
        num_scalar_prefetch=0,
        grid=grid,
        in_specs=[
            # Activations: index map ignores g -> fetched once per batch tile, reused across glimpses.
            pl.BlockSpec((TB, Vp, Dv), lambda b, g: (b, 0, 0)),         # v      (bf16)
            pl.BlockSpec((TB, Qp, Dq), lambda b, g: (b, 0, 0)),         # q      (f32)
            pl.BlockSpec((TB, 1, Qp, Vp), lambda b, g: (b, g, 0, 0)),   # atten  (bf16, per glimpse)
            # Per-glimpse weights: only one glimpse resident at a time (x2 pipeline buffers), and the
            # next glimpse's weight DMA overlaps the current glimpse's matmuls.
            # TODO(synk): if B//TB is large, a resident-weights variant (constant index map over a
            # single batch grid axis) trades VMEM residency for less repeated weight DMA.
            pl.BlockSpec((1, Dv, M), lambda b, g: (g, 0, 0)),           # Wv (bf16)
            pl.BlockSpec((1, 1, M), lambda b, g: (g, 0, 0)),            # bv (f32)
            pl.BlockSpec((1, Dq, M), lambda b, g: (g, 0, 0)),           # Wq (bf16)
            pl.BlockSpec((1, 1, M), lambda b, g: (g, 0, 0)),            # bq (f32)
            pl.BlockSpec((1, M, M), lambda b, g: (g, 0, 0)),            # Wa (bf16)
            pl.BlockSpec((1, 1, M), lambda b, g: (g, 0, 0)),            # ba (f32)
        ],
        out_specs=pl.BlockSpec((TB, Dq), lambda b, g: (b, 0)),          # lane-dense; written at g == G-1
        scratch_shapes=[pltpu.VMEM((TB, M), jnp.float32)],              # cross-glimpse residual acc
    )

    out = pl.pallas_call(
        kernel,
        out_shape=jax.ShapeDtypeStruct((B, Dq), jnp.float32),
        grid_spec=grid_spec,
        compiler_params=pltpu.CompilerParams(
            dimension_semantics=("parallel", "arbitrary"),
            # Per-generation tuning: v5e can raise this to 64-96 MiB and grow batch_tile;
            # v7x (64 MiB physical) keep <= ~48-56 MiB and shrink batch_tile instead.
            vmem_limit_bytes=vmem_limit_bytes,
        ),
    )(v_b, q_in, atten_t, wv, bv, wq, bq, wa, ba)
    return out


# ---------------- parameter setup (plain JAX glue) ----------------

def init_fcnet(key, in_size, out_size):
    """weight_norm(nn.Linear(in, out), dim=None): W = g * V / ||V||_F ; returns (W^T, b)."""
    k1, k2, k3 = jax.random.split(key, 3)
    v_raw = jax.random.normal(k1, (out_size, in_size), jnp.float32) * 0.1
    g = jax.random.uniform(k2, (), jnp.float32, minval=0.5, maxval=1.5)
    b = jax.random.normal(k3, (out_size,), jnp.float32) * 0.05
    w_eff = g * v_raw / jnp.linalg.norm(v_raw)
    return w_eff.T, b          # (in, out), (out,)


def init_params(key, v_features, q_features, mid_features, glimpses):
    wv, bv, wq, bq, wa, ba = [], [], [], [], [], []
    for _ in range(glimpses):
        kv, kq, ka, key = jax.random.split(key, 4)
        w, b = init_fcnet(kv, v_features, mid_features); wv.append(w); bv.append(b[None, :])
        w, b = init_fcnet(kq, q_features, mid_features); wq.append(w); bq.append(b[None, :])
        w, b = init_fcnet(ka, mid_features, mid_features); wa.append(w); ba.append(b[None, :])
    return dict(
        wv=jnp.stack(wv), bv=jnp.stack(bv),
        wq=jnp.stack(wq), bq=jnp.stack(bq),
        wa=jnp.stack(wa), ba=jnp.stack(ba),
    )


def reference(v, q, atten, params, glimpses):
    """Pure-f32 JAX reference (f32 weights, unpadded shapes)."""
    q_cur = q.astype(jnp.float32)
    v32 = v.astype(jnp.float32)
    for g in range(glimpses):
        v_lin = jax.nn.relu(v32 @ params["wv"][g] + params["bv"][g])
        q_lin = jax.nn.relu(q_cur @ params["wq"][g] + params["bq"][g])
        h = jnp.einsum("bim,bij,bjm->bm", v_lin, atten[:, g], q_lin)
        atten_h = h @ params["wa"][g] + params["ba"][g]
        q_cur = q_cur + atten_h[:, None, :]
    return q_cur.sum(axis=1)


if __name__ == "__main__":
    # Small but hardware-meaningful shapes: lane-dense 128 features, 32 batches -> grid (4, 2)
    # (>= 2 batch steps per v7x TensorCore); num_obj / que_len deliberately NOT multiples of 8
    # so the wrapper-side zero-padding path is exercised.
    B, num_obj, que_len = 32, 20, 12
    v_features = q_features = mid_features = 128   # residual requires mid == q_features
    glimpses = 2

    key = jax.random.PRNGKey(0)
    kv, kq, ka, kp = jax.random.split(key, 4)
    v = jax.random.normal(kv, (B, num_obj, v_features), jnp.float32)
    q = jax.random.normal(kq, (B, que_len, q_features), jnp.float32)
    atten = jax.random.normal(ka, (B, glimpses, num_obj, que_len), jnp.float32)

    params = init_params(kp, v_features, q_features, mid_features, glimpses)

    out = apply_attention(v, q, atten, params, glimpses, batch_tile=8)
    out = jax.block_until_ready(out)

    ref = jax.block_until_ready(reference(v, q, atten, params, glimpses))
    np.testing.assert_allclose(np.asarray(out), np.asarray(ref), rtol=2e-2, atol=2e-2)

    print("KERNEL_OK")
</pallas_src>

<mosaic_0001>
module attributes {stable_mosaic.version = 11 : i64} {
  func.func @apply_attention_kernel(%arg0: i32, %arg1: i32, %arg2: memref<8x24x128xbf16, #tpu.memory_space<vmem>>, %arg3: memref<8x16x128xf32, #tpu.memory_space<vmem>>, %arg4: memref<8x1x16x24xbf16, #tpu.memory_space<vmem>>, %arg5: memref<1x128x128xbf16, #tpu.memory_space<vmem>>, %arg6: memref<1x1x128xf32, #tpu.memory_space<vmem>>, %arg7: memref<1x128x128xbf16, #tpu.memory_space<vmem>>, %arg8: memref<1x1x128xf32, #tpu.memory_space<vmem>>, %arg9: memref<1x128x128xbf16, #tpu.memory_space<vmem>>, %arg10: memref<1x1x128xf32, #tpu.memory_space<vmem>>, %arg11: memref<8x128xf32, #tpu.memory_space<vmem>>, %arg12: memref<8x128xf32, #tpu.memory_space<vmem>>) attributes {dimension_semantics = [#tpu.dimension_semantics<parallel>, #tpu.dimension_semantics<arbitrary>], iteration_bounds = array<i64: 4, 2>, scalar_prefetch = 0 : i64, scratch_operands = 1 : i64, tpu.core_type = #tpu.core_type<tc>, window_params = [{transform_indices = @transform_0, window_bounds = array<i64: 8, 24, 128>}, {transform_indices = @transform_1, window_bounds = array<i64: 8, 16, 128>}, {transform_indices = @transform_2, window_bounds = array<i64: 8, 1, 16, 24>}, {transform_indices = @transform_3, window_bounds = array<i64: 1, 128, 128>}, {transform_indices = @transform_4, window_bounds = array<i64: 1, 1, 128>}, {transform_indices = @transform_5, window_bounds = array<i64: 1, 128, 128>}, {transform_indices = @transform_6, window_bounds = array<i64: 1, 1, 128>}, {transform_indices = @transform_7, window_bounds = array<i64: 1, 128, 128>}, {transform_indices = @transform_8, window_bounds = array<i64: 1, 1, 128>}, {transform_indices = @transform_9, window_bounds = array<i64: 8, 128>}]} {
    %c0_i32 = arith.constant 0 : i32
    %0 = arith.cmpi eq, %arg1, %c0_i32 : i32
    %1 = arith.extui %0 : i1 to i32
    %c0_i32_0 = arith.constant 0 : i32
    %2 = arith.cmpi ne, %1, %c0_i32_0 : i32
    scf.if %2 {
      %cst_42 = arith.constant 0.000000e+00 : f32
      %55 = vector.broadcast %cst_42 : f32 to vector<8x128xf32>
      %c0_43 = arith.constant 0 : index
      %c0_44 = arith.constant 0 : index
      %56 = vector.load %arg12[%c0_43, %c0_44] : memref<8x128xf32, #tpu.memory_space<vmem>>, vector<8x128xf32>
      tpu.vector_store %arg12[%c0_43, %c0_44], %55 {strides = array<i32>} : memref<8x128xf32, #tpu.memory_space<vmem>>, vector<8x128xf32>,
    } else {
    }
    %c0 = arith.constant 0 : index
    %c0_1 = arith.constant 0 : index
    %c0_2 = arith.constant 0 : index
    %3 = vector.load %arg5[%c0, %c0_1, %c0_2] : memref<1x128x128xbf16, #tpu.memory_space<vmem>>, vector<1x128x128xbf16>
    %4 = vector.shape_cast %3 : vector<1x128x128xbf16> to vector<128x128xbf16>
    %c0_3 = arith.constant 0 : index
    %c0_4 = arith.constant 0 : index
    %c0_5 = arith.constant 0 : index
    %5 = vector.load %arg7[%c0_3, %c0_4, %c0_5] : memref<1x128x128xbf16, #tpu.memory_space<vmem>>, vector<1x128x128xbf16>
    %6 = vector.shape_cast %5 : vector<1x128x128xbf16> to vector<128x128xbf16>
    %c0_6 = arith.constant 0 : index
    %c0_7 = arith.constant 0 : index
    %c0_8 = arith.constant 0 : index
    %7 = vector.load %arg9[%c0_6, %c0_7, %c0_8] : memref<1x128x128xbf16, #tpu.memory_space<vmem>>, vector<1x128x128xbf16>
    %8 = vector.shape_cast %7 : vector<1x128x128xbf16> to vector<128x128xbf16>
    %c0_9 = arith.constant 0 : index
    %c0_10 = arith.constant 0 : index
    %c0_11 = arith.constant 0 : index
    %9 = vector.load %arg6[%c0_9, %c0_10, %c0_11] : memref<1x1x128xf32, #tpu.memory_space<vmem>>, vector<1x1x128xf32>
    %10 = vector.shape_cast %9 : vector<1x1x128xf32> to vector<1x128xf32>
    %c0_12 = arith.constant 0 : index
    %c0_13 = arith.constant 0 : index
    %c0_14 = arith.constant 0 : index
    %11 = vector.load %arg8[%c0_12, %c0_13, %c0_14] : memref<1x1x128xf32, #tpu.memory_space<vmem>>, vector<1x1x128xf32>
    %12 = vector.shape_cast %11 : vector<1x1x128xf32> to vector<1x128xf32>
    %c0_15 = arith.constant 0 : index
    %c0_16 = arith.constant 0 : index
    %c0_17 = arith.constant 0 : index
    %13 = vector.load %arg10[%c0_15, %c0_16, %c0_17] : memref<1x1x128xf32, #tpu.memory_space<vmem>>, vector<1x1x128xf32>
    %14 = vector.shape_cast %13 : vector<1x1x128xf32> to vector<1x128xf32>
    %c0_18 = arith.constant 0 : index
    %c0_19 = arith.constant 0 : index
    %c0_20 = arith.constant 0 : index
    %15 = vector.load %arg2[%c0_18, %c0_19, %c0_20] : memref<8x24x128xbf16, #tpu.memory_space<vmem>>, vector<8x24x128xbf16>
    %16 = vector.shape_cast %15 : vector<8x24x128xbf16> to vector<192x128xbf16>
    %cst = arith.constant dense<0.000000e+00> : vector<192x128xf32>
    %17 = tpu.matmul %16, %4, %cst {dimension_numbers = #tpu.dot_dimension_numbers<[1], [0], [0], [1], [0, 0, 1, 1], [], []>} : vector<192x128xbf16>, vector<128x128xbf16>, vector<192x128xf32> -> vector<192x128xf32>
    %18 = vector.broadcast %10 : vector<1x128xf32> to vector<192x128xf32>
    %19 = arith.addf %17, %18 : vector<192x128xf32>
    %cst_21 = arith.constant 0.000000e+00 : f32
    %20 = vector.broadcast %cst_21 : f32 to vector<192x128xf32>
    %21 = arith.maximumf %19, %20 : vector<192x128xf32>
    %c0_22 = arith.constant 0 : index
    %c0_23 = arith.constant 0 : index
    %c0_24 = arith.constant 0 : index
    %22 = vector.load %arg3[%c0_22, %c0_23, %c0_24] : memref<8x16x128xf32, #tpu.memory_space<vmem>>, vector<8x16x128xf32>
    %23 = vector.shape_cast %22 : vector<8x16x128xf32> to vector<128x128xf32>
    %24 = arith.truncf %23 : vector<128x128xf32> to vector<128x128xbf16>
    %cst_25 = arith.constant dense<0.000000e+00> : vector<128x128xf32>
    %25 = tpu.matmul %24, %6, %cst_25 {dimension_numbers = #tpu.dot_dimension_numbers<[1], [0], [0], [1], [0, 0, 1, 1], [], []>} : vector<128x128xbf16>, vector<128x128xbf16>, vector<128x128xf32> -> vector<128x128xf32>
    %26 = vector.shape_cast %25 : vector<128x128xf32> to vector<8x16x128xf32>
    %c0_26 = arith.constant 0 : index
    %c0_27 = arith.constant 0 : index
    %27 = vector.load %arg12[%c0_26, %c0_27] : memref<8x128xf32, #tpu.memory_space<vmem>>, vector<8x128xf32>
    %28 = arith.truncf %27 : vector<8x128xf32> to vector<8x128xbf16>
    %cst_28 = arith.constant dense<0.000000e+00> : vector<8x128xf32>
    %29 = tpu.matmul %28, %6, %cst_28 {dimension_numbers = #tpu.dot_dimension_numbers<[1], [0], [0], [1], [0, 0, 1, 1], [], []>} : vector<8x128xbf16>, vector<128x128xbf16>, vector<8x128xf32> -> vector<8x128xf32>
    %30 = vector.shape_cast %29 : vector<8x128xf32> to vector<8x1x128xf32>
    %31 = vector.broadcast %30 : vector<8x1x128xf32> to vector<8x16x128xf32>
    %32 = arith.addf %26, %31 : vector<8x16x128xf32>
    %33 = vector.shape_cast %12 : vector<1x128xf32> to vector<1x1x128xf32>
    %34 = vector.broadcast %33 : vector<1x1x128xf32> to vector<8x16x128xf32>
    %35 = arith.addf %32, %34 : vector<8x16x128xf32>
    %cst_29 = arith.constant 0.000000e+00 : f32
    %36 = vector.broadcast %cst_29 : f32 to vector<8x16x128xf32>
    %37 = arith.maximumf %35, %36 : vector<8x16x128xf32>
    %c0_30 = arith.constant 0 : index
    %c0_31 = arith.constant 0 : index
    %c0_32 = arith.constant 0 : index
    %c0_33 = arith.constant 0 : index
    %38 = vector.load %arg4[%c0_30, %c0_31, %c0_32, %c0_33] : memref<8x1x16x24xbf16, #tpu.memory_space<vmem>>, vector<8x1x16x24xbf16>
    %39 = vector.shape_cast %38 : vector<8x1x16x24xbf16> to vector<8x16x24xbf16>
    %40 = vector.shape_cast %21 : vector<192x128xf32> to vector<8x24x128xf32>
    %41 = arith.truncf %40 : vector<8x24x128xf32> to vector<8x24x128xbf16>
    "tpu.trace_start"() <{level = 10 : i32, message = "bqv,bvm->bqm"}> : () -> ()
    %cst_34 = arith.constant dense<0.000000e+00> : vector<8x16x128xf32>
    %42 = tpu.matmul %39, %41, %cst_34 {dimension_numbers = #tpu.dot_dimension_numbers<[2], [1], [1], [2], [0, 0, 0, 1, 1, 2], [0], [0]>} : vector<8x16x24xbf16>, vector<8x24x128xbf16>, vector<8x16x128xf32> -> vector<8x16x128xf32>
    "tpu.trace_stop"() : () -> ()
    %43 = arith.mulf %42, %37 : vector<8x16x128xf32>
    %cst_35 = arith.constant dense<0.000000e+00> : vector<8x128xf32>
    %44 = vector.multi_reduction <add>, %43, %cst_35 [1] : vector<8x16x128xf32> to vector<8x128xf32>
    %45 = arith.truncf %44 : vector<8x128xf32> to vector<8x128xbf16>
    %cst_36 = arith.constant dense<0.000000e+00> : vector<8x128xf32>
    %46 = tpu.matmul %45, %8, %cst_36 {dimension_numbers = #tpu.dot_dimension_numbers<[1], [0], [0], [1], [0, 0, 1, 1], [], []>} : vector<8x128xbf16>, vector<128x128xbf16>, vector<8x128xf32> -> vector<8x128xf32>
    %47 = vector.broadcast %14 : vector<1x128xf32> to vector<8x128xf32>
    %48 = arith.addf %46, %47 : vector<8x128xf32>
    %c0_37 = arith.constant 0 : index
    %c0_38 = arith.constant 0 : index
    %49 = vector.load %arg12[%c0_37, %c0_38] : memref<8x128xf32, #tpu.memory_space<vmem>>, vector<8x128xf32>
    %50 = arith.addf %49, %48 : vector<8x128xf32>
    %c0_39 = arith.constant 0 : index
    %c0_40 = arith.constant 0 : index
    %51 = vector.load %arg12[%c0_39, %c0_40] : memref<8x128xf32, #tpu.memory_space<vmem>>, vector<8x128xf32>
    tpu.vector_store %arg12[%c0_39, %c0_40], %50 {strides = array<i32>} : memref<8x128xf32, #tpu.memory_space<vmem>>, vector<8x128xf32>,
    %c1_i32 = arith.constant 1 : i32
    %52 = arith.cmpi eq, %arg1, %c1_i32 : i32
    %53 = arith.extui %52 : i1 to i32
    %c0_i32_41 = arith.constant 0 : i32
    %54 = arith.cmpi ne, %53, %c0_i32_41 : i32
    scf.if %54 {
      %cst_42 = arith.constant dense<0.000000e+00> : vector<8x128xf32>
      %55 = vector.multi_reduction <add>, %22, %cst_42 [1] : vector<8x16x128xf32> to vector<8x128xf32>
      %c0_43 = arith.constant 0 : index
      %c0_44 = arith.constant 0 : index
      %56 = vector.load %arg12[%c0_43, %c0_44] : memref<8x128xf32, #tpu.memory_space<vmem>>, vector<8x128xf32>
      %cst_45 = arith.constant 1.200000e+01 : f32
      %57 = vector.broadcast %cst_45 : f32 to vector<8x128xf32>
      %58 = arith.mulf %57, %56 : vector<8x128xf32>
      %59 = arith.addf %55, %58 : vector<8x128xf32>
      %c0_46 = arith.constant 0 : index
      %c0_47 = arith.constant 0 : index
      %60 = vector.load %arg11[%c0_46, %c0_47] : memref<8x128xf32, #tpu.memory_space<vmem>>, vector<8x128xf32>
      tpu.vector_store %arg11[%c0_46, %c0_47], %59 {strides = array<i32>} : memref<8x128xf32, #tpu.memory_space<vmem>>, vector<8x128xf32>,
    } else {
    }
    return
  }
  func.func @transform_0(%arg0: i32, %arg1: i32) -> (i32, i32, i32) {
    %c0_i32 = arith.constant 0 : i32
    %c0_i32_0 = arith.constant 0 : i32
    %c0_i32_1 = arith.constant 0 : i32
    return %arg0, %c0_i32, %c0_i32_0 : i32, i32, i32
  }
  func.func @transform_1(%arg0: i32, %arg1: i32) -> (i32, i32, i32) {
    %c0_i32 = arith.constant 0 : i32
    %c0_i32_0 = arith.constant 0 : i32
    %c0_i32_1 = arith.constant 0 : i32
    return %arg0, %c0_i32, %c0_i32_0 : i32, i32, i32
  }
  func.func @transform_2(%arg0: i32, %arg1: i32) -> (i32, i32, i32, i32) {
    %c0_i32 = arith.constant 0 : i32
    %c0_i32_0 = arith.constant 0 : i32
    %c0_i32_1 = arith.constant 0 : i32
    return %arg0, %arg1, %c0_i32, %c0_i32_0 : i32, i32, i32, i32
  }
  func.func @transform_3(%arg0: i32, %arg1: i32) -> (i32, i32, i32) {
    %c0_i32 = arith.constant 0 : i32
    %c0_i32_0 = arith.constant 0 : i32
    %c0_i32_1 = arith.constant 0 : i32
    return %arg1, %c0_i32, %c0_i32_0 : i32, i32, i32
  }
  func.func @transform_4(%arg0: i32, %arg1: i32) -> (i32, i32, i32) {
    %c0_i32 = arith.constant 0 : i32
    %c0_i32_0 = arith.constant 0 : i32
    %c0_i32_1 = arith.constant 0 : i32
    return %arg1, %c0_i32, %c0_i32_0 : i32, i32, i32
  }
  func.func @transform_5(%arg0: i32, %arg1: i32) -> (i32, i32, i32) {
    %c0_i32 = arith.constant 0 : i32
    %c0_i32_0 = arith.constant 0 : i32
    %c0_i32_1 = arith.constant 0 : i32
    return %arg1, %c0_i32, %c0_i32_0 : i32, i32, i32
  }
  func.func @transform_6(%arg0: i32, %arg1: i32) -> (i32, i32, i32) {
    %c0_i32 = arith.constant 0 : i32
    %c0_i32_0 = arith.constant 0 : i32
    %c0_i32_1 = arith.constant 0 : i32
    return %arg1, %c0_i32, %c0_i32_0 : i32, i32, i32
  }
  func.func @transform_7(%arg0: i32, %arg1: i32) -> (i32, i32, i32) {
    %c0_i32 = arith.constant 0 : i32
    %c0_i32_0 = arith.constant 0 : i32
    %c0_i32_1 = arith.constant 0 : i32
    return %arg1, %c0_i32, %c0_i32_0 : i32, i32, i32
  }
  func.func @transform_8(%arg0: i32, %arg1: i32) -> (i32, i32, i32) {
    %c0_i32 = arith.constant 0 : i32
    %c0_i32_0 = arith.constant 0 : i32
    %c0_i32_1 = arith.constant 0 : i32
    return %arg1, %c0_i32, %c0_i32_0 : i32, i32, i32
  }
  func.func @transform_9(%arg0: i32, %arg1: i32) -> (i32, i32) {
    %c0_i32 = arith.constant 0 : i32
    %c0_i32_0 = arith.constant 0 : i32
    return %arg0, %c0_i32 : i32, i32
  }
}

</mosaic_0001>

<bundles_post_ra>
// kernel: tpu_custom_call.1
= control target key start
LH: loop header
LB: loop body
LE: loop exit
PB: predicated region body
PF: predicated region fallthrough
CT: control target
= control target key end

     0   :  { %s3873_s0 = inlined_call_operand.vmem [shape: bf16[32,24,128], index: 0, kind: input, shape index: {}]   ;;  %s3874_s1 = inlined_call_operand.vmem [shape: f32[32,16,128], index: 1, kind: input, shape index: {}]   ;;  %s3875_s2 = inlined_call_operand.vmem [shape: bf16[32,2,16,24], index: 2, kind: input, shape index: {}]   ;;  %s3876_s3 = inlined_call_operand.hbm [shape: bf16[2,128,128], index: 3, kind: input, shape index: {}]   ;;  %s3877_s4 = inlined_call_operand.vmem [shape: f32[2,1,128], index: 4, kind: input, shape index: {}]   ;;  %s3878_s5 = inlined_call_operand.hbm [shape: bf16[2,128,128], index: 5, kind: input, shape index: {}]   ;;  %s3879_s6 = inlined_call_operand.vmem [shape: f32[2,1,128], index: 6, kind: input, shape index: {}]   ;;  %s3880_s7 = inlined_call_operand.hbm [shape: bf16[2,128,128], index: 7, kind: input, shape index: {}]   ;;  %s3881_s8 = inlined_call_operand.vmem [shape: f32[2,1,128], index: 8, kind: input, shape index: {}]   ;;  %s3882_s9 = inlined_call_operand.hbm [shape: f32[32,128], index: 9, kind: output, shape index: {}]  }
   0x1   :  { %3905 = sst [smem:[#allocation29_spill]] %s3873_s0 }
   0x2   :  { %3906 = sst [smem:[#allocation30_spill]] %s3875_s2 }
   0x3   :  { %3907 = sst [smem:[#allocation31_spill]] %s3876_s3 }
   0x4   :  { %3908 = sst [smem:[#allocation32_spill]] %s3877_s4 }
   0x5   :  { %3909 = sst [smem:[#allocation33_spill]] %s3878_s5 }
   0x6   :  { %3910 = sst [smem:[#allocation34_spill]] %s3879_s6 }
   0x7   :  { %3911 = sst [smem:[#allocation35_spill]] %s3880_s7 }
   0x8   :  { %3912 = sst [smem:[#allocation36_spill]] %s3881_s8 }
   0x9   :  { %3913 = sst [smem:[#allocation37_spill]] %s3882_s9 }
   0xa   :  { %14 = vsyncpa [#allocation5], 0 }
   0xb   :  { %16 = vsyncpa [#allocation5 + $0x1], 0 }
   0xc   :  { %17 = vsyncpa [#allocation8], 0 }
   0xd   :  { %19 = vsyncpa [#allocation8 + $0x1], 0 }
   0xe   :  { %20 = vsyncpa [#allocation6], 0 }
   0xf   :  { %22 = vsyncpa [#allocation6 + $0x1], 0  ;;  %s3159_s30 = smov 0   ;;  %s3161_s10 = smov 0  }
  0x10   :  { %s3163_s11 = smov 0   ;;  %s3165_s12 = smov 0  }
  0x11   :  { %s3167_s13 = smov 0   ;;  %s3169_s14 = smov 0  }
  0x12   :  { %s3171_s15 = smov 0   ;;  %s3173_s16 = smov 0  }
  0x13   :  { %s3175_s17 = smov 0   ;;  %s3177_s18 = smov 0  }
  0x14   :  { %s3179_s19 = smov 0   ;;  %s3181_s20 = smov 0  }
  0x15   :  { %s3183_s21 = smov 0  }
  0x16 LB: > { %3914 = sst [smem:[#allocation14_spill]] %s3049_s30  ;;  %s3225_s22 = sadd.s32 4294967295, %s3097_s21   ;;  %s3097_s21 = sphi %s3183_s21, %s28_s21   ;;  %s3093_s20 = sphi %s3181_s20, %s3968_s20   ;;  %s3089_s19 = sphi %s3179_s19, %s3967_s19   ;;  %s3085_s18 = sphi %s3177_s18, %s3966_s18   ;;  %s3081_s17 = sphi %s3175_s17, %s3965_s17   ;;  %s3077_s16 = sphi %s3173_s16, %s3964_s16   ;;  %s3073_s15 = sphi %s3171_s15, %s3963_s15   ;;  %s3069_s14 = sphi %s3169_s14, %s3962_s14   ;;  %s3065_s13 = sphi %s3167_s13, %s3971_s13   ;;  %s3061_s12 = sphi %s3165_s12, %s3960_s12   ;;  %s3057_s11 = sphi %s3163_s11, %s3959_s11   ;;  %s3053_s10 = sphi %s3161_s10, %s3970_s10   ;;  %s3049_s30 = sphi %s3159_s30, %s3969_s30  }
  0x17   : > { %3915 = sst [smem:[#allocation15_spill]] %s3057_s11  ;;  %s37_s24 = sadd.s32 1, %s3089_s19 }
  0x18   : > { %3916 = sst [smem:[#allocation16_spill]] %s3065_s13  ;;  %s40_s25 = sadd.s32 1, %s3093_s20 }
  0x19   : > { %3917 = sst [smem:[#allocation17_spill]] %s3069_s14  ;;  %p38_p0 = scmp.ge.s32.totalorder %s37_s24, 2 }
  0x1a   : > { %3918 = sst [smem:[#allocation18_spill]] %s3077_s16  ;;  %s101_s26 = sadd.s32 1, %s3077_s16 }
  0x1b   : > { %3919 = sst [smem:[#allocation19_spill]] %s3089_s19  ;;  %p108_p1 = scmp.ne.s32.totalorder %s3077_s16, %s3073_s15 }
  0x1c   : > { %3920 = sst [smem:[#allocation20_spill]] %s3093_s20  ;;  %p109_p2 = scmp.eq.s32.totalorder %s3097_s21, 0 }
  0x1d   : > { %3921 = sst [smem:[#allocation21_spill]] %s3097_s21  ;;  %s3973_s24 = smov (%p38_p0, %s37_s24), 0 }
  0x1e   : > { %3922 = sst [smem:[#allocation22_spill]] %s3973_s24  ;;  %s3975_s25 = smov (!%p38_p0, %s40_s25), %s3093_s20 }
  0x1f   : > { %s97_s27 = ssub.s32 %s3089_s19, %s3973_s24  ;;  %p3239_p3 = por %p109_p2, %p108_p1 }
  0x20   : > { %p42_p4 = scmp.ge.s32.totalorder %s3975_s25, 4  ;;  %p125_p5 = scmp.eq.s32.totalorder %s97_s27, 0 }
  0x21   : > { %s127_s29 = sadd.s32 1, %s3069_s14  ;;  %p134_p6 = scmp.ne.s32.totalorder %s3069_s14, %s3065_s13 }
  0x22   : > { %s3977_s25 = smov (%p42_p4, %s3975_s25), 0  ;;  %p140_p8 = scmp.ne.s32.totalorder %s3065_s13, %s3061_s12 }
  0x23   : > { %3924 = sst [smem:[#allocation23_spill]] %s3977_s25  ;;  %s96_s24 = ssub.s32 %s3093_s20, %s3977_s25 }
  0x24   : > { %s3249_s23 = scalar_select %p125_p5, %s3069_s14, %s127_s29  }
  0x25   : > { %p3253_p7 = por %p134_p6, %p109_p2  ;;  %s98_s8 = sor.u32 %s97_s27, %s96_s24 }
  0x26   : > { %3925 = sst [smem:[#allocation24_spill]] %s3249_s23  ;;  %p99_p9 = scmp.eq.s32.totalorder %s98_s8, 0 }
  0x27   : > { %p141_p10 = scmp.eq.s32.totalorder %s3225_s22, 0  ;;  %p281_p11 = scmp.eq.s32.totalorder %s96_s24, 0 }
  0x28   : > { %s283_s6 = sadd.s32 1, %s3057_s11  ;;  %p293_p13 = scmp.ne.s32.totalorder %s3057_s11, %s3053_s10 }
  0x29   : > { %s3262_s0 = scalar_select %p99_p9, %s3077_s16, %s101_s26  }
  0x2a   : > { %p3264_p12 = por %p141_p10, %p140_p8  ;;  %p294_p0 = scmp.eq.s32.totalorder %s3225_s22, 7 }
  0x2b   : > { %3927 = sst [smem:[#allocation25_spill]] %s3262_s0  ;;  %p299_p1 = scmp.ne.s32.totalorder %s3053_s10, %s3049_s30 }
  0x2c   : > { %s3271_s29 = scalar_select %p281_p11, %s3057_s11, %s283_s6  }
  0x2d   : > { %s3930_s25 = sadd.s32 4294967294, %s3097_s21   ;;  %p3278_p4 = por %p294_p0, %p293_p13 }
  0x2e   : > { %3929 = sst [smem:[#allocation26_spill]] %s3271_s29  ;;  %p300_p2 = scmp.eq.s32.totalorder %s3930_s25, 7 }
  0x2f   : > { %s3931_s27 = scalar_select %p3278_p4, 1, 0 }
  0x30   : > { %p3282_p5 = por %p300_p2, %p299_p1  ;;  %p2357_p6 = scmp.ge.s32.totalorder %s3097_s21, 8 }
  0x31   : > { %3932 = sst [smem:[#allocation27_spill]] %s3931_s27 }
  0x32   : > { %s3933_s8 = scalar_select %p3282_p5, 1, 0 }
  0x33   : > { %316 = sbr.rel (%p2357_p6) target bundleno = 156 (0x9c), region = 16 }
  0x34   : > { %3934 = sst [smem:[#allocation28_spill]] %s3933_s8 }
  0x3a   : > { %339 = sbr.rel (!%p3239_p3) target bundleno = 72 (0x48), region = 28  ;;  %s341_s6 = sand.u32 (%p3239_p3), 1, %s3077_s16  }
  0x3b   : > { %s2360_s12 = sshll.u32 (%p3239_p3), %s3089_s19, 1  ;;  %s2358_s24 = sshll.u32 (%p3239_p3), %s341_s6, 6 }
  0x3c   : > { %s2444_s25 = sshll.u32 (%p3239_p3), %s3093_s20, 5  ;;  %s3935_s2 = sld [smem:[#allocation30_spill]] (%p3239_p3) }
  0x3d   : > { %s347_s26 = sadd.s32 (%p3239_p3), %s2444_s25, %s2360_s12  ;;  %s343_s8 = scalar_lea.vmem (%p3239_p3), [#allocation3], %s2358_s24 }
  0x3e   : > { %s2362_s0 = sshll.u32 (%p3239_p3), %s347_s26, 2 }
  0x42   : > { %s349_s11 = scalar_lea.vmem %s3935_s2, %s2362_s0 }
  0x43   : > { %v365_v0 = vld [vmem:[%s349_s11] sm:$0xff]   ;;  %v369_v1 = vld [vmem:[%s349_s11 + $0x10] sm:$0xff]  }
  0x44   : > { %v373_v2 = vld [vmem:[%s349_s11 + $0x20] sm:$0xff]   ;;  %366 = vst [vmem:[%s343_s8] sm:$0xff] %v365_v0   ;;  %370 = vst [vmem:[%s343_s8 + $0x8] sm:$0xff] %v369_v1   ;;  %v377_v3 = vld [vmem:[%s349_s11 + $0x30] sm:$0xff]  }
  0x45   : > { %374 = vst [vmem:[%s343_s8 + $0x10] sm:$0xff] %v373_v2   ;;  %v381_v4 = vld [vmem:[%s349_s11 + $0x40] sm:$0xff]   ;;  %v385_v5 = vld [vmem:[%s349_s11 + $0x50] sm:$0xff]   ;;  %378 = vst [vmem:[%s343_s8 + $0x18] sm:$0xff] %v377_v3  }
  0x46   : > { %382 = vst [vmem:[%s343_s8 + $0x20] sm:$0xff] %v381_v4   ;;  %386 = vst [vmem:[%s343_s8 + $0x28] sm:$0xff] %v385_v5   ;;  %v389_v6 = vld [vmem:[%s349_s11 + $0x60] sm:$0xff]   ;;  %v393_v7 = vld [vmem:[%s349_s11 + $0x70] sm:$0xff]  }
  0x47   : > { %390 = vst [vmem:[%s343_s8 + $0x30] sm:$0xff] %v389_v6   ;;  %394 = vst [vmem:[%s343_s8 + $0x38] sm:$0xff] %v393_v7  }
  0x48 PF: > { %s3888_s0 = sand.u32 1, %s3069_s14   ;;  %s3297_s23 = sshll.u32 %s3089_s19, 10 }
  0x49   : > { %s3301_s28 = sshll.u32 %s3888_s0, 6  ;;  %s479_s29 = sand.u32 1, %s3097_s21  }
  0x4a   : > { %s3936_s5 = sld [smem:[#allocation33_spill]]  ;;  %s483_s8 = scalar_lea.vmem [#allocation7], %s3301_s28 }
  0x4b   : > { %s490_s24 = sshll.u32 %s483_s8, 4  ;;  %s3313_s25 = scalar_lea.sflag [#allocation8], %s479_s29  ;;  %s3311_s24 = int_to_ptr.vmem [resolvable:$true] %s490_s24 }
  0x50   : > { %s3308_s11 = scalar_lea.hbm %s3936_s5, %s3297_s23  ;;  %s2875_s6 = scalar_lea.hbm %s3936_s5, 2048 }
  0x51   : > { %s2871_s26 = scalar_lea.hbm %s3308_s11, 1024  ;;  %p2876_p10 = scmp.lt.u32.totalorder %s3308_s11, %s3936_s5 }
  0x52   : > { %p2872_p3 = scmp.ne.s32.totalorder %s3308_s11, %s2871_s26  ;;  %p2877_p11 = scmp.lt.u32.totalorder %s2875_s6, %s2871_s26 }
  0x53   : > { %p2879_p0 = scmp.lt.u32.totalorder %s2871_s26, %s3308_s11 }
  0x54   : > { %p2873_p8 = pnand %p2872_p3, %p3253_p7  ;;  %p2878_p13 = por %p2877_p11, %p2876_p10 }
  0x56   : > { %p2874_p9 = pneg %p2873_p8  ;;  %p2880_p1 = por %p2879_p0, %p2878_p13 }
  0x58   : > { %p2881_p2 = pnand %p2880_p1, %p2874_p9 }
  0x5a   : > { %2884 = shalt.err (!%p2881_p2)
}
  0x5b   : > { %s2885_s29 = scalar_lea.vmem %s3311_s24, 1024  ;;  %s3099_s2 = smov [#allocation7]  }
  0x5c   : > { %p2886_p6 = scmp.ne.s32.totalorder %s3311_s24, %s2885_s29  ;;  %s2889_s0 = sshll.u32 %s3099_s2, 4  ;;  %s2890_s0 = int_to_ptr.vmem [resolvable:$false] %s2889_s0 }
  0x5d   : > { %s2891_s20 = scalar_lea.vmem %s2890_s0, 2048  ;;  %p2892_p5 = scmp.lt.s32.totalorder %s3311_s24, %s2890_s0 }
  0x5e   : > { %p2887_p3 = pnand %p2886_p6, %p3253_p7  ;;  %p2893_p4 = scmp.lt.s32.totalorder %s2891_s20, %s2885_s29 }
  0x60   : > { %p2888_p8 = pneg %p2887_p3  ;;  %p2894_p10 = por %p2893_p4, %p2892_p5 }
  0x62   : > { %p2895_p11 = pnand %p2894_p10, %p2888_p8 }
  0x64   : > { %2898 = shalt.err (!%p2895_p11)
}
  0x65   : > { %s3893_s8 = smov 64   ;;  %s3895_s26 = smov 4  }
  0x66   : > { %2705 = dma.hbm_to_vmem [thread:$0]  (%p3253_p7), %s3308_s11, 1024, %s3311_s24, %s3313_s25, %s3893_s8, %s3893_s8, %s3895_s26  }
  0x67   : > { %s3937_s3 = sld [smem:[#allocation31_spill]]  ;;  %s456_s2 = scalar_lea.vmem [#allocation4], %s3301_s28 }
  0x68   : > { %s463_s0 = sshll.u32 %s456_s2, 4  ;;  %s3938_s7 = sld [smem:[#allocation35_spill]]  ;;  %s3347_s0 = int_to_ptr.vmem [resolvable:$true] %s463_s0 }
  0x69   : > { %s3939_s16 = sand.u32 1, %s3069_s14  }
  0x6a   : > { %s3357_s11 = scalar_lea.sflag [#allocation5], %s3939_s16 }
  0x6d   : > { %s3344_s29 = scalar_lea.hbm %s3937_s3, %s3297_s23  ;;  %s2903_s8 = scalar_lea.hbm %s3937_s3, 2048 }
  0x6e   : > { %s3353_s19 = scalar_lea.hbm %s3938_s7, %s3297_s23  ;;  %s2899_s24 = scalar_lea.hbm %s3344_s29, 1024 }
  0x6f   : > { %p2900_p4 = scmp.ne.s32.totalorder %s3344_s29, %s2899_s24  ;;  %p2904_p13 = scmp.lt.u32.totalorder %s3344_s29, %s3937_s3 }
  0x70   : > { %p2905_p0 = scmp.lt.u32.totalorder %s2903_s8, %s2899_s24  ;;  %p2907_p2 = scmp.lt.u32.totalorder %s2899_s24, %s3344_s29 }
  0x71   : > { %p2901_p5 = pnand %p2900_p4, %p3253_p7 }
  0x72   : > { %p2906_p1 = por %p2905_p0, %p2904_p13 }
  0x73   : > { %p2902_p9 = pneg %p2901_p5 }
  0x74   : > { %p2908_p6 = por %p2907_p2, %p2906_p1 }
  0x76   : > { %p2909_p3 = pnand %p2908_p6, %p2902_p9 }
  0x78   : > { %2912 = shalt.err (!%p2909_p3)
}
  0x79   : > { %s2913_s5 = scalar_lea.vmem %s3347_s0, 1024  ;;  %s3102_s16 = smov [#allocation4]  }
  0x7a   : > { %p2914_p8 = scmp.ne.s32.totalorder %s3347_s0, %s2913_s5  ;;  %s2917_s23 = sshll.u32 %s3102_s16, 4  ;;  %s2918_s23 = int_to_ptr.vmem [resolvable:$false] %s2917_s23 }
  0x7b   : > { %s2919_s26 = scalar_lea.vmem %s2918_s23, 2048  ;;  %p2920_p4 = scmp.lt.s32.totalorder %s3347_s0, %s2918_s23 }
  0x7c   : > { %p2915_p10 = pnand %p2914_p8, %p3253_p7  ;;  %p2921_p5 = scmp.lt.s32.totalorder %s2919_s26, %s2913_s5 }
  0x7e   : > { %p2916_p11 = pneg %p2915_p10  ;;  %p2922_p13 = por %p2921_p5, %p2920_p4 }
  0x80   : > { %p2923_p0 = pnand %p2922_p13, %p2916_p11 }
  0x82   : > { %2926 = shalt.err (!%p2923_p0)
}
  0x83   : > { %s3940_s8 = smov 4   ;;  %s3941_s20 = smov 64  }
  0x84   : > { %2704 = dma.hbm_to_vmem [thread:$0]  (%p3253_p7), %s3344_s29, 1024, %s3347_s0, %s3357_s11, %s3941_s20, %s3941_s20, %s3940_s8  }
  0x85   : > { %s510_s24 = scalar_lea.vmem [#allocation9], %s3301_s28  ;;  %s2927_s12 = scalar_lea.hbm %s3353_s19, 1024 }
  0x86   : > { %s517_s6 = sshll.u32 %s510_s24, 4  ;;  %p2928_p9 = scmp.ne.s32.totalorder %s3353_s19, %s2927_s12  ;;  %s3385_s6 = int_to_ptr.vmem [resolvable:$true] %s517_s6 }
  0x87   : > { %s2931_s16 = scalar_lea.hbm %s3938_s7, 2048  ;;  %p2932_p6 = scmp.lt.u32.totalorder %s3353_s19, %s3938_s7 }
  0x88   : > { %p2929_p1 = pnand %p2928_p9, %p3253_p7  ;;  %p2933_p3 = scmp.lt.u32.totalorder %s2931_s16, %s2927_s12 }
  0x89   : > { %p2935_p10 = scmp.lt.u32.totalorder %s2927_s12, %s3353_s19 }
  0x8a   : > { %p2930_p2 = pneg %p2929_p1  ;;  %p2934_p8 = por %p2933_p3, %p2932_p6 }
  0x8c   : > { %p2936_p11 = por %p2935_p10, %p2934_p8 }
  0x8e   : > { %p2937_p4 = pnand %p2936_p11, %p2930_p2 }
  0x90   : > { %2940 = shalt.err (!%p2937_p4)
}
  0x91   : > { %s2941_s28 = scalar_lea.vmem %s3385_s6, 1024  ;;  %s3103_s29 = smov [#allocation9]  }
  0x92   : > { %p2942_p5 = scmp.ne.s32.totalorder %s3385_s6, %s2941_s28  ;;  %s2945_s0 = sshll.u32 %s3103_s29, 4  ;;  %s2946_s0 = int_to_ptr.vmem [resolvable:$false] %s2945_s0 }
  0x93   : > { %s2947_s11 = scalar_lea.vmem %s2946_s0, 2048  ;;  %p2948_p9 = scmp.lt.s32.totalorder %s3385_s6, %s2946_s0 }
  0x94   : > { %p2943_p13 = pnand %p2942_p5, %p3253_p7  ;;  %p2949_p1 = scmp.lt.s32.totalorder %s2947_s11, %s2941_s28 }
  0x96   : > { %p2944_p0 = pneg %p2943_p13  ;;  %p2950_p6 = por %p2949_p1, %p2948_p9 }
  0x98   : > { %p2951_p3 = pnand %p2950_p6, %p2944_p0 }
  0x9a   : > { %2954 = shalt.err (!%p2951_p3)
}
  0x9b   : > { %2706 = dma.hbm_to_vmem [thread:$0]  (%p3253_p7), %s3353_s19, 1024, %s3385_s6, %s3313_s25, %s3941_s20, %s3941_s20, %s3940_s8  }
  0x9c PF: > { %p2372_p2 = scmp.ge.s32.totalorder %s3097_s21, 1  ;;  %p531_p8 = scmp.lt.s32.totalorder %s3097_s21, 9 }
  0x9e   : > { %p532_p10 = pnand %p2372_p2, %p531_p8 }
  0x9f   : > { %s538_s24 = sand.u32 (!%p532_p10), 1, %s3073_s15   ;;  %s544_s12 = sand.u32 (!%p532_p10), 1, %s3065_s13  }
  0xa0   : > { %535 = sbr.rel (%p532_p10) target bundleno = 994 (0x3e2), region = 93  ;;  %s2373_s9 = sshll.u32 (!%p532_p10), %s538_s24, 6 }
  0xa1   : > { %s2374_s2 = sshll.u32 (!%p532_p10), %s544_s12, 6  ;;  %s3416_s5 = scalar_lea.vmem (!%p532_p10), [#allocation3], %s2373_s9 }
  0xa2   : > { %s545_s16 = scalar_lea.sflag (!%p532_p10), [#allocation5], %s544_s12  ;;  %s3418_s23 = scalar_lea.vmem (!%p532_p10), [#allocation4], %s2374_s2 }
  0xa7   : > { %3036 = dma.done.wait (%p3264_p12), %s545_s16, 1024  }
  0xa8   : > { %3038 = vsyncadd (%p3264_p12), %s545_s16, 4294966272  ;;  %s553_s19 = sand.u32 1, %s3225_s22   ;;  %s3425_s8 = scalar_lea.vmem [#allocation7], %s2374_s2 }
  0xa9   : > { %s554_s25 = scalar_lea.sflag [#allocation8], %s553_s19 }
  0xaa   : > { %3040 = dma.done.wait (%p3264_p12), %s554_s25, 2048  }
  0xab   : > { %3042 = vsyncadd (%p3264_p12), %s554_s25, 4294965248  ;;  %s3897_s15 = sand.u32 1, %s3053_s10   ;;  %s2378_s6 = sshll.u32 %s3085_s18, 3 }
  0xac   : > { %s3434_s20 = sshll.u32 %s3897_s15, 3  ;;  %p637_p7 = scmp.lt.s32.totalorder %s2378_s6, 31 }
  0xad   : > { %p651_p11 = scmp.lt.s32.totalorder %s3081_s17, 1  ;;  %s3942_s12 = sld [smem:[#allocation32_spill]] }
  0xae   : > { %s3979_s6 = smov (!%p637_p7, %s2378_s6), 31  ;;  %s3943_s25 = sld [smem:[#allocation29_spill]] }
  0xaf   : > { %s3439_s22 = scalar_select %p651_p11, %s3081_s17, 1 }
  0xb0   : > { %s2703_s4 = smul.u32 12, %s3979_s6  ;;  %s2448_s26 = sshll.u32 %s3979_s6, 4 }
  0xb1   : > { %s3444_s0 = scalar_lea.vmem %s3874_s1, %s2448_s26  ;;  %s3944_s14 = sld [smem:[#allocation34_spill]] }
  0xb2   : > { %s3945_s21 = sld [smem:[#allocation36_spill]]  ;;  %s3463_s28 = scalar_lea.vmem [#allocation9], %s2374_s2 }
  0xb3   : > { %s653_s9 = scalar_lea.vmem %s3942_s12, %s3439_s22  ;;  %s635_s26 = scalar_lea.vmem [#allocation10], %s3434_s20 }
  0xb4   : > { %s3453_s15 = scalar_lea.vmem %s3943_s25, %s2703_s4  ;;  %p2383_p12 = scmp.ne.s32.totalorder %s3081_s17, 0 }
  0xb5   : > { %v3104_v8 = vmov (!%p2383_p12), 0.0  }
  0xb6   : > { %664 = sbr.rel (%p2383_p12) target bundleno = 189 (0xbd), region = 113  ;;  %665 = vst [vmem:[#allocation2] sm:$0xff] (!%p2383_p12), %v3104_v8 }
  0xb7   : > { %s656_s13 = scalar_lea.vmem %s3944_s14, %s3439_s22 }
  0xb8   : > { %s659_s27 = scalar_lea.vmem %s3945_s21, %s3439_s22 }
  0xbd PF: > { %v2827_v9 = vld [vmem:[%s3418_s23] sm:$0xff]   ;;  %v2828_v10 = vld [vmem:[%s3418_s23 + $0x8] sm:$0xff]   ;;  %v2829_v11 = vld [vmem:[%s3418_s23 + $0x10] sm:$0xff]   ;;  %v3105_v28 = vmov 0.0   ;;  %vm3106_vm0 = vmmov 0   ;;  %vm1416_vm1 = vcmask 1043456  }
  0xbe   : > { %2527 = vmatprep.subr.bf16.mxu0 %v2827_v9  ;;  %v2830_v12 = vld [vmem:[%s3418_s23 + $0x18] sm:$0xff]   ;;  %v2831_v14 = vld [vmem:[%s3418_s23 + $0x20] sm:$0xff]   ;;  %v2832_v15 = vld [vmem:[%s3418_s23 + $0x28] sm:$0xff]   ;;  %vm1412_vm2 = vcmask 195584   ;;  %vm1927_vm3 = vcmask 1041409   ;;  %vm1929_vm4 = vcmask 1042434  }
  0xbf   : > { %2528 = vmatpush3.bf16.msra.mxu0 %v2827_v9  ;;  %v2835_v13 = vld [vmem:[%s3453_s15] sm:$0xff]   ;;  %v2833_v16 = vld [vmem:[%s3418_s23 + $0x30] sm:$0xff]   ;;  %v2847_v17 = vld [vmem:[%s3425_s8] sm:$0xff]   ;;  %vm1931_vm5 = vcmask 1043459   ;;  %vm1933_vm6 = vcmask 1044484   ;;  %vm1935_vm7 = vcmask 1045509  }
  0xc0   : > { %2529 = vmatprep.subr.bf16.mxu0 %v2828_v10  ;;  %2543 = vmatprep.mubr.bf16.mxu0 %v2835_v13  ;;  %v2848_v18 = vld [vmem:[%s3425_s8 + $0x8] sm:$0xff]   ;;  %v2834_v19 = vld [vmem:[%s3418_s23 + $0x38] sm:$0xff]   ;;  %v2849_v20 = vld [vmem:[%s3425_s8 + $0x10] sm:$0xff]   ;;  %vm1937_vm8 = vcmask 1046534   ;;  %vm1939_vm9 = vcmask 1047559   ;;  %p2439_p4 = scmp.ne.s32.totalorder %s3081_s17, 1 }
  0xc1   : > { %2567 = vmatprep.subr.bf16.mxu1 %v2847_v17  ;;  %v2850_v21 = vld [vmem:[%s3425_s8 + $0x18] sm:$0xff]   ;;  %v3484_v23 = vld [vmem:[%s3444_s0 + $0x8] sm:$0xff]  ;;  %v2837_v26 = vld [vmem:[%s3453_s15 + $0x10] sm:$0xff]  }
  0xc2   : > { %2568 = vmatpush3.bf16.msra.mxu1 %v2847_v17  ;;  %v3481_v22 = vld [vmem:[%s3444_s0] sm:$0xff]  ;;  %v2836_v24 = vld [vmem:[%s3453_s15 + $0x8] sm:$0xff]   ;;  %v2852_v29 = vld [vmem:[%s3425_s8 + $0x28] sm:$0xff]  }
  0xc3   : > { %2530 = vmatpush3.bf16.msra.mxu0 %v2828_v10  ;;  %2569 = vmatprep.subr.bf16.mxu1 %v2848_v18  ;;  %v1036_v25 = vpack.c.bf16 %v3484_v23, %v3481_v22  ;;  %v2851_v27 = vld [vmem:[%s3425_s8 + $0x20] sm:$0xff]   ;;  %v2838_v30 = vld [vmem:[%s3453_s15 + $0x18] sm:$0xff]   ;;  %v2839_v31 = vld [vmem:[%s3453_s15 + $0x20] sm:$0xff]  }
  0xc4   : > { %2531 = vmatprep.subr.bf16.mxu0 %v2829_v11  ;;  %v2853_v32 = vld [vmem:[%s3425_s8 + $0x30] sm:$0xff]   ;;  %v2854_v33 = vld [vmem:[%s3425_s8 + $0x38] sm:$0xff]   ;;  %v2840_v34 = vld [vmem:[%s3453_s15 + $0x28] sm:$0xff]  }
  0xc5   : > { %2583 = vmatprep.mubr.bf16.mxu1 %v1036_v25  ;;  %v2841_v35 = vld [vmem:[%s3453_s15 + $0x30] sm:$0xff]   ;;  %v3506_v37 = vld [vmem:[%s3444_s0 + $0x18] sm:$0xff]  ;;  %v3509_v38 = vld [vmem:[%s3444_s0 + $0x20] sm:$0xff] }
  0xc6   : > { %2570 = vmatpush3.bf16.msra.mxu1 %v2848_v18  ;;  %v3503_v36 = vld [vmem:[%s3444_s0 + $0x10] sm:$0xff]  ;;  %v3512_v39 = vld [vmem:[%s3444_s0 + $0x28] sm:$0xff]  ;;  %v2842_v42 = vld [vmem:[%s3453_s15 + $0x38] sm:$0xff]  }
  0xc7   : > { %2532 = vmatpush3.bf16.msra.mxu0 %v2829_v11  ;;  %2571 = vmatprep.subr.bf16.mxu1 %v2849_v20  ;;  %v1037_v40 = vpack.c.bf16 %v3506_v37, %v3503_v36  ;;  %v1038_v41 = vpack.c.bf16 %v3512_v39, %v3509_v38  ;;  %v2843_v43 = vld [vmem:[%s3453_s15 + $0x40] sm:$0xff]   ;;  %v3524_v44 = vld [vmem:[%s3444_s0 + $0x30] sm:$0xff]  ;;  %v3527_v45 = vld [vmem:[%s3444_s0 + $0x38] sm:$0xff] }
  0xc8   : > { %2533 = vmatprep.subr.bf16.mxu0 %v2830_v12  ;;  %v1039_v46 = vpack.c.bf16 %v3527_v45, %v3524_v44  ;;  %v2844_v47 = vld [vmem:[%s3453_s15 + $0x48] sm:$0xff]   ;;  %v2845_v48 = vld [vmem:[%s3453_s15 + $0x50] sm:$0xff]   ;;  %v2846_v49 = vld [vmem:[%s3453_s15 + $0x58] sm:$0xff]  }
  0xc9   : > { %v3537_v50 = vld [vmem:[#allocation2] sm:$0xff]  ;;  %v3549_v53 = vld [vmem:[%s3444_s0 + $0x48] sm:$0xff]  ;;  %v3554_v55 = vld [vmem:[%s3444_s0 + $0x50] sm:$0xff] }
  0xca   : > { %2572 = vmatpush3.bf16.msra.mxu1 %v2849_v20  ;;  %v1190_v51 = vpack.c.bf16 %v3537_v50, %v3537_v50  ;;  %v3546_v52 = vld [vmem:[%s3444_s0 + $0x40] sm:$0xff]  ;;  %v3557_v56 = vld [vmem:[%s3444_s0 + $0x58] sm:$0xff]  ;;  %v3565_v59 = vld [vmem:[%s3444_s0 + $0x68] sm:$0xff] }
  0xcb   : > { %2534 = vmatpush3.bf16.msra.mxu0 %v2830_v12  ;;  %2573 = vmatprep.subr.bf16.mxu1 %v2850_v21  ;;  %v1040_v54 = vpack.c.bf16 %v3549_v53, %v3546_v52  ;;  %v1041_v57 = vpack.c.bf16 %v3557_v56, %v3554_v55  ;;  %v3562_v58 = vld [vmem:[%s3444_s0 + $0x60] sm:$0xff]  ;;  %v3570_v61 = vld [vmem:[%s3444_s0 + $0x70] sm:$0xff]  ;;  %v3573_v62 = vld [vmem:[%s3444_s0 + $0x78] sm:$0xff] }
  0xcc   : > { %2535 = vmatprep.subr.bf16.mxu0 %v2831_v14  ;;  %v1042_v60 = vpack.c.bf16 %v3565_v59, %v3562_v58  ;;  %v1043_v63 = vpack.c.bf16 %v3573_v62, %v3570_v61  ;;  %v3584_v0 = vld [vmem:[%s653_s9] ss:$0 sm:$0xff] }
  0xce   : > { %2574 = vmatpush3.bf16.msra.mxu1 %v2850_v21 }
  0xcf   : > { %2536 = vmatpush3.bf16.msra.mxu0 %v2831_v14  ;;  %2575 = vmatprep.subr.bf16.mxu1 %v2851_v27 }
  0xd0   : > { %2537 = vmatprep.subr.bf16.mxu0 %v2832_v15 }
  0xd2   : > { %2576 = vmatpush3.bf16.msra.mxu1 %v2851_v27 }
  0xd3   : > { %2538 = vmatpush3.bf16.msra.mxu0 %v2832_v15  ;;  %2577 = vmatprep.subr.bf16.mxu1 %v2852_v29 }
  0xd4   : > { %2539 = vmatprep.subr.bf16.mxu0 %v2833_v16 }
  0xd6   : > { %2578 = vmatpush3.bf16.msra.mxu1 %v2852_v29 }
  0xd7   : > { %2540 = vmatpush3.bf16.msra.mxu0 %v2833_v16  ;;  %2579 = vmatprep.subr.bf16.mxu1 %v2853_v32 }
  0xd8   : > { %2541 = vmatprep.subr.bf16.mxu0 %v2834_v19 }
  0xda   : > { %2580 = vmatpush3.bf16.msra.mxu1 %v2853_v32 }
  0xdb   : > { %2542 = vmatpush3.bf16.msra.mxu0 %v2834_v19  ;;  %2581 = vmatprep.subr.bf16.mxu1 %v2854_v33 }
  0xdc   : > { %2599 = vmatprep.subr.bf16.mxu0 %v3105_v28 }
  0xde   : > { %2544 = vmatmul.mubr.bf16.vlgmr.msra.gmra.mrb[0].mxu0 %v2836_v24  ;;  %2582 = vmatpush3.bf16.msra.mxu1 %v2854_v33 }
  0xdf   : > { %2547 = vmatprep.mubr.bf16.mxu0 %v2837_v26  ;;  %2600 = vmatpush3.bf16.msra.mxu0 %v2847_v17 }
  0xe0   : > { %2601 = vmatprep.subr.bf16.mxu0 %v3105_v28  ;;  %2619 = vmatprep.subr.bf16.mxu1 %v3105_v28 }
  0xe1   : > { %2584 = vmatmul.mubr.bf16.vlgmr.msra.gmra.mrb[0].mxu1 %v1037_v40 }
  0xe2   : > { %2587 = vmatprep.mubr.bf16.mxu1 %v1038_v41 }
  0xe3   : > { %2602 = vmatpush3.bf16.msra.mxu0 %v2848_v18 }
  0xe4   : > { %2603 = vmatprep.subr.bf16.mxu0 %v3105_v28 }
  0xe6   : > { %2548 = vmatmul.mubr.bf16.gmra.mrb[4].mxu0 %v2838_v30  ;;  %v2855_v30 = vld [vmem:[%s3416_s5] sm:$0xff]  }
  0xe7   : > { %2551 = vmatprep.mubr.bf16.mxu0 %v2839_v31  ;;  %2604 = vmatpush3.bf16.msra.mxu0 %v2849_v20 }
  0xe8   : > { %2605 = vmatprep.subr.bf16.mxu0 %v3105_v28 }
  0xe9   : > { %2588 = vmatmul.mubr.bf16.gmra.mrb[4].mxu1 %v1039_v46 }
  0xea   : > { %2591 = vmatprep.mubr.bf16.mxu1 %v1040_v54 }
  0xeb   : > { %2606 = vmatpush3.bf16.msra.mxu0 %v2850_v21 }
  0xec   : > { %2607 = vmatprep.subr.bf16.mxu0 %v3105_v28 }
  0xee   : > { %2552 = vmatmul.mubr.bf16.gmra.mrb[8].mxu0 %v2840_v34 }
  0xef   : > { %2555 = vmatprep.mubr.bf16.mxu0 %v2841_v35  ;;  %2608 = vmatpush3.bf16.msra.mxu0 %v2851_v27 }
  0xf0   : > { %2609 = vmatprep.subr.bf16.mxu0 %v3105_v28 }
  0xf1   : > { %2592 = vmatmul.mubr.bf16.gmra.mrb[8].mxu1 %v1041_v57 }
  0xf2   : > { %2595 = vmatprep.mubr.bf16.mxu1 %v1042_v60 }
  0xf3   : > { %2610 = vmatpush3.bf16.msra.mxu0 %v2852_v29 }
  0xf4   : > { %2611 = vmatprep.subr.bf16.mxu0 %v3105_v28 }
  0xf6   : > { %2556 = vmatmul.mubr.bf16.gmra.mrb[12].mxu0 %v2842_v42 }
  0xf7   : > { %2559 = vmatprep.mubr.bf16.mxu0 %v2843_v43  ;;  %2612 = vmatpush3.bf16.msra.mxu0 %v2853_v32 }
  0xf8   : > { %2613 = vmatprep.subr.bf16.mxu0 %v3105_v28 }
  0xf9   : > { %2596 = vmatmul.mubr.bf16.gmra.mrb[12].mxu1 %v1043_v63 }
  0xfa   : > { %2623 = vmatprep.mubr.msk.bf16.mxu1 %vm3106_vm0, %v3105_v28 }
  0xfb   : > { %2614 = vmatpush3.bf16.msra.mxu0 %v2854_v33 }
  0xfc   : > { %2627 = vmatprep.subr.bf16.mxu0 %v3105_v28 }
  0xfe   : > { %2560 = vmatmul.mubr.bf16.gmra.mrb[16].mxu0 %v2844_v47 }
  0xff   : > { %2563 = vmatprep.mubr.bf16.mxu0 %v2845_v48 }
 0x106   : > { %2564 = vmatmul.mubr.bf16.gmra.mrb[20].mxu0 %v2846_v49  ;;  %v2856_v49 = vld [vmem:[%s3416_s5 + $0x8] sm:$0xff]  }
 0x107   : > { %2615 = vmatprep.mubr.msk.bf16.mxu0 %vm3106_vm0, %v3105_v28 }
 0x10e   : > { %2616 = vmatmul.mubr.bf16.vlgmr.msra.gmra.mrb[24].mxu0 %v1190_v51 }
 0x10f   : > { %2631 = vmatprep.mubr.msk.bf16.mxu0 %vm3106_vm0, %v3105_v28 }
 0x1b1   : > { %v2545_v1 = vpop.f32.mrb[0].mxu0 }
 0x1b2   : > { %v910_v2 = vadd.f32 %v2545_v1, %v3584_v0  ;;  %v901_v3 = vpop.f32.mrb[1].mxu0 }
 0x1b3   : > { %v902_v4 = vadd.f32 %v3584_v0, %v901_v3  ;;  %v2546_v5 = vpop.f32.mrb[2].mxu0 }
 0x1b4   : > { %v904_v6 = vpop.f32.mrb[3].mxu0  ;;  %v998_v8 = vmax.f32 %v910_v2, 0.0  ;;  %v913_v11 = vadd.f32 %v2546_v5, %v3584_v0  ;;  %v3609_v57 = vpop.f32.mrb[0].mxu1 }
 0x1b5   : > { %v905_v7 = vadd.f32 %v3584_v0, %v904_v6  ;;  %v996_v9 = vmax.f32 %v902_v4, 0.0  ;;  %v3612_v63 = vpop.f32.mrb[1].mxu1 }
 0x1b6   : > { %v1392_v14 = vpack.c.bf16 %v998_v8, %v998_v8  ;;  %v999_v21 = vmax.f32 %v913_v11, 0.0  ;;  %v3614_v4 = vpop.f32.mrb[2].mxu1 }
 0x1b7   : > { %v997_v10 = vmax.f32 %v905_v7, 0.0  ;;  %v3617_v5 = vpop.f32.mrb[3].mxu1 }
 0x1b8   : > { %v1418_v29 = vsel %vm1416_vm1, %v1392_v14, 0 }
 0x1b9   : > { %v1391_v12 = vpack.c.bf16 %v997_v10, %v996_v9  ;;  %v2549_v13 = vpop.f32.mrb[4].mxu0  ;;  %v2857_v9 = vld [vmem:[%s3416_s5 + $0x10] sm:$0xff]  }
 0x1ba   : > { %v926_v15 = vadd.f32 %v2549_v13, %v3584_v0  ;;  %v917_v16 = vpop.f32.mrb[5].mxu0 }
 0x1bb   : > { %v918_v17 = vadd.f32 %v3584_v0, %v917_v16  ;;  %2620 = vmatpush3.bf16.msra.mxu1 %v1391_v12  ;;  %v2550_v18 = vpop.f32.mrb[6].mxu0 }
 0x1bc   : > { %v929_v19 = vadd.f32 %v2550_v18, %v3584_v0  ;;  %v920_v20 = vpop.f32.mrb[7].mxu0  ;;  %2621 = vmatprep.subr.bf16.mxu1 %v3105_v28  ;;  %v1002_v26 = vmax.f32 %v926_v15, 0.0 }
 0x1bd   : > { %v1000_v24 = vmax.f32 %v918_v17, 0.0  ;;  %v921_v25 = vadd.f32 %v3584_v0, %v920_v20  ;;  %v3629_v17 = vpop.f32.mrb[4].mxu1  ;;  %v2858_v20 = vld [vmem:[%s3416_s5 + $0x18] sm:$0xff]  }
 0x1be   : > { %v1003_v27 = vmax.f32 %v929_v19, 0.0 }
 0x1bf   : > { %v1393_v31 = vpack.c.bf16 %v1000_v24, %v999_v21  ;;  %v1001_v32 = vmax.f32 %v921_v25, 0.0  ;;  %2622 = vmatpush3.bf16.msra.mxu1 %v1418_v29  ;;  %v3635_v21 = vpop.f32.mrb[5].mxu1 }
 0x1c0   : > { %v1395_v33 = vpack.c.bf16 %v1003_v27, %v1002_v26  ;;  %2635 = vmatprep.subr.bf16.mxu1 %v3105_v28  ;;  %v3637_v26 = vpop.f32.mrb[6].mxu1 }
 0x1c1   : > { %v1394_v34 = vpack.c.bf16 %v1001_v32, %v1001_v32  ;;  %v2553_v35 = vpop.f32.mrb[8].mxu0  ;;  %2628 = vmatpush3.bf16.msra.mxu0 %v1393_v31  ;;  %v3640_v27 = vpop.f32.mrb[7].mxu1 }
 0x1c2   : > { %v933_v40 = vpop.f32.mrb[9].mxu0  ;;  %2624 = vmatmul.mubr.msk.bf16.vlgmr.msra.gmra.mrb[16].mxu1 %vm1412_vm2, %v2855_v30  ;;  %2629 = vmatprep.subr.bf16.mxu0 %v3105_v28  ;;  %v942_v41 = vadd.f32 %v2553_v35, %v3584_v0 }
 0x1c3   : > { %v934_v42 = vadd.f32 %v3584_v0, %v933_v40  ;;  %v2554_v43 = vpop.f32.mrb[10].mxu0  ;;  %v1470_v46 = vsel %vm1416_vm1, %v1394_v34, 0  ;;  %2636 = vmatpush3.bf16.msra.mxu1 %v1395_v33  ;;  %2639 = vmatprep.mubr.msk.bf16.mxu1 %vm3106_vm0, %v3105_v28 }
 0x1c4   : > { %v945_v47 = vadd.f32 %v2554_v43, %v3584_v0  ;;  %v936_v48 = vpop.f32.mrb[11].mxu0  ;;  %2637 = vmatprep.subr.bf16.mxu1 %v3105_v28  ;;  %v1006_v1 = vmax.f32 %v942_v41, 0.0 }
 0x1c5   : > { %v1004_v51 = vmax.f32 %v934_v42, 0.0  ;;  %v937_v54 = vadd.f32 %v3584_v0, %v936_v48  ;;  %2630 = vmatpush3.bf16.msra.mxu0 %v1470_v46 }
 0x1c6   : > { %v1007_v60 = vmax.f32 %v945_v47, 0.0  ;;  %2643 = vmatprep.subr.bf16.mxu0 %v3105_v28 }
 0x1c7   : > { %v1396_v2 = vpack.c.bf16 %v1004_v51, %v1004_v51  ;;  %v1005_v3 = vmax.f32 %v937_v54, 0.0  ;;  %v2859_v54 = vld [vmem:[%s3416_s5 + $0x20] sm:$0xff]  }
 0x1c8   : > { %2632 = vmatmul.mubr.msk.bf16.vlgmr.msra.gmra.mrb[28].mxu0 %vm1412_vm2, %v2856_v49  ;;  %v1398_v10 = vpack.c.bf16 %v1007_v60, %v1007_v60 }
 0x1c9   : > { %v1397_v6 = vpack.c.bf16 %v1006_v1, %v1005_v3  ;;  %v2557_v7 = vpop.f32.mrb[12].mxu0  ;;  %v1522_v8 = vsel %vm1416_vm1, %v1396_v2, 0  ;;  %2647 = vmatprep.mubr.msk.bf16.mxu0 %vm3106_vm0, %v3105_v28 }
 0x1ca   : > { %v958_v11 = vadd.f32 %v2557_v7, %v3584_v0  ;;  %v949_v12 = vpop.f32.mrb[13].mxu0  ;;  %2638 = vmatpush3.bf16.msra.mxu1 %v1522_v8  ;;  %v1574_v19 = vsel %vm1416_vm1, %v1398_v10, 0 }
 0x1cb   : > { %v950_v13 = vadd.f32 %v3584_v0, %v949_v12  ;;  %v2558_v14 = vpop.f32.mrb[14].mxu0  ;;  %2644 = vmatpush3.bf16.msra.mxu0 %v1397_v6  ;;  %2651 = vmatprep.subr.bf16.mxu1 %v3105_v28 }
 0x1cc   : > { %v952_v15 = vpop.f32.mrb[15].mxu0  ;;  %2645 = vmatprep.subr.bf16.mxu0 %v3105_v28  ;;  %v1010_v18 = vmax.f32 %v958_v11, 0.0  ;;  %v961_v29 = vadd.f32 %v2558_v14, %v3584_v0  ;;  %v2860_v14 = vld [vmem:[%s3416_s5 + $0x28] sm:$0xff]  }
 0x1cd   : > { %v953_v16 = vadd.f32 %v3584_v0, %v952_v15  ;;  %2640 = vmatmul.mubr.msk.bf16.vlgmr.msra.gmra.mrb[20].mxu1 %vm1412_vm2, %v2857_v9  ;;  %v1008_v24 = vmax.f32 %v950_v13, 0.0 }
 0x1ce   : > { %2655 = vmatprep.mubr.msk.bf16.mxu1 %vm3106_vm0, %v3105_v28  ;;  %v1400_v32 = vpack.c.bf16 %v1010_v18, %v1010_v18  ;;  %v1011_v43 = vmax.f32 %v961_v29, 0.0 }
 0x1cf   : > { %v1009_v25 = vmax.f32 %v953_v16, 0.0  ;;  %2646 = vmatpush3.bf16.msra.mxu0 %v1574_v19 }
 0x1d0   : > { %2659 = vmatprep.subr.bf16.mxu0 %v3105_v28  ;;  %v1626_v51 = vsel %vm1416_vm1, %v1400_v32, 0  ;;  %v2862_v32 = vld [vmem:[%s3416_s5 + $0x38] sm:$0xff]  }
 0x1d1   : > { %v1399_v30 = vpack.c.bf16 %v1009_v25, %v1008_v24  ;;  %v2561_v31 = vpop.f32.mrb[16].mxu0 }
 0x1d2   : > { %v974_v33 = vadd.f32 %v2561_v31, %v3584_v0  ;;  %v965_v34 = vpop.f32.mrb[17].mxu0  ;;  %2648 = vmatmul.mubr.msk.bf16.vlgmr.msra.gmra.mrb[32].mxu0 %vm1412_vm2, %v2858_v20 }
 0x1d3   : > { %v966_v35 = vadd.f32 %v3584_v0, %v965_v34  ;;  %2652 = vmatpush3.bf16.msra.mxu1 %v1399_v30  ;;  %v2562_v40 = vpop.f32.mrb[18].mxu0  ;;  %2663 = vmatprep.mubr.msk.bf16.mxu0 %vm3106_vm0, %v3105_v28  ;;  %v2861_v30 = vld [vmem:[%s3416_s5 + $0x30] sm:$0xff]  }
 0x1d4   : > { %v977_v41 = vadd.f32 %v2562_v40, %v3584_v0  ;;  %v968_v42 = vpop.f32.mrb[19].mxu0  ;;  %2653 = vmatprep.subr.bf16.mxu1 %v3105_v28  ;;  %v1014_v48 = vmax.f32 %v974_v33, 0.0  ;;  %v3107_v33 = vmov 1966171168  }
 0x1d5   : > { %v1012_v46 = vmax.f32 %v966_v35, 0.0  ;;  %v969_v47 = vadd.f32 %v3584_v0, %v968_v42  ;;  %v1234_v34 = vunpack.c.l.s4 %v3107_v33  ;;  %v1236_v35 = vlaneseq }
 0x1d6   : > { %v1015_v49 = vmax.f32 %v977_v41, 0.0 }
 0x1d7   : > { %v1401_v60 = vpack.c.bf16 %v1012_v46, %v1011_v43  ;;  %v1013_v1 = vmax.f32 %v969_v47, 0.0  ;;  %2654 = vmatpush3.bf16.msra.mxu1 %v1626_v51  ;;  %v1235_v40 = vunpack.c.0.s8 %v1234_v34  ;;  %v1237_v41 = vshrl.u32 %v1236_v35, 7 }
 0x1d8   : > { %v1403_v2 = vpack.c.bf16 %v1015_v49, %v1014_v48  ;;  %2667 = vmatprep.subr.bf16.mxu1 %v3105_v28 }
 0x1d9   : > { %v1402_v3 = vpack.c.bf16 %v1013_v1, %v1013_v1  ;;  %v2565_v6 = vpop.f32.mrb[20].mxu0  ;;  %2660 = vmatpush3.bf16.msra.mxu0 %v1401_v60  ;;  %v1238_v42 = vsub.s32 %v1235_v40, %v1237_v41  ;;  %v1283_v48 = vsub.s32 0, %v1237_v41 }
 0x1da   : > { %v981_v7 = vpop.f32.mrb[21].mxu0  ;;  %2656 = vmatmul.mubr.msk.bf16.vlgmr.msra.gmra.mrb[24].mxu1 %vm1412_vm2, %v2859_v54  ;;  %2661 = vmatprep.subr.bf16.mxu0 %v3105_v28  ;;  %v990_v8 = vadd.f32 %v2565_v6, %v3584_v0 }
 0x1db   : > { %v982_v9 = vadd.f32 %v3584_v0, %v981_v7  ;;  %v2566_v10 = vpop.f32.mrb[22].mxu0  ;;  %v1678_v11 = vsel %vm1416_vm1, %v1402_v3, 0  ;;  %2668 = vmatpush3.bf16.msra.mxu1 %v1403_v2  ;;  %2671 = vmatprep.mubr.msk.bf16.mxu1 %vm3106_vm0, %v3105_v28 }
 0x1dc   : > { %v993_v12 = vadd.f32 %v2566_v10, %v3584_v0  ;;  %v984_v13 = vpop.f32.mrb[23].mxu0  ;;  %2669 = vmatprep.subr.bf16.mxu1 %v3105_v28  ;;  %v1018_v19 = vmax.f32 %v990_v8, 0.0 }
 0x1dd   : > { %v1016_v15 = vmax.f32 %v982_v9, 0.0  ;;  %v985_v16 = vadd.f32 %v3584_v0, %v984_v13  ;;  %2662 = vmatpush3.bf16.msra.mxu0 %v1678_v11 }
 0x1de   : > { %v1019_v18 = vmax.f32 %v993_v12, 0.0  ;;  %2675 = vmatprep.subr.bf16.mxu0 %v3105_v28 }
 0x1df   : > { %v1404_v20 = vpack.c.bf16 %v1016_v15, %v1016_v15  ;;  %v1017_v24 = vmax.f32 %v985_v16, 0.0 }
 0x1e0   : > { %2664 = vmatmul.mubr.msk.bf16.vlgmr.msra.gmra.mrb[36].mxu0 %vm1412_vm2, %v2860_v14  ;;  %v1406_v31 = vpack.c.bf16 %v1019_v18, %v1019_v18 }
 0x1e1   : > { %v1405_v25 = vpack.c.bf16 %v1018_v19, %v1017_v24  ;;  %v1730_v29 = vsel %vm1416_vm1, %v1404_v20, 0  ;;  %2679 = vmatprep.mubr.msk.bf16.mxu0 %vm3106_vm0, %v3105_v28  ;;  %v1225_v43 = vpop.f32.mrb[24].mxu0  ;;  %v2593_v24 = vpop.f32.mrb[8].mxu1 }
 0x1e2   : > { %2670 = vmatpush3.bf16.msra.mxu1 %v1730_v29  ;;  %v1782_v0 = vsel %vm1416_vm1, %v1406_v31, 0  ;;  %v1232_v46 = vcombine.high %v1225_v43, %v1225_v43  ;;  %v1239_v47 = vrot.slane %v1225_v43, %v1238_v42  ;;  %v2617_v49 = vpop.f32.mrb[25].mxu0  ;;  %v1158_v31 = vpop.f32.mrb[9].mxu1 }
 0x1e3   : > { %2676 = vmatpush3.bf16.msra.mxu0 %v1405_v25  ;;  %2683 = vmatprep.subr.bf16.mxu1 %v3105_v28  ;;  %v1228_v51 = vpop.f32.mrb[26].mxu0 }
 0x1e4   : > { %2677 = vmatprep.subr.bf16.mxu0 %v3105_v28  ;;  %v1246_v54 = vrot.slane %v1232_v46, %v1238_v42  ;;  %v1247_v60 = vcombine.high %v1239_v47, %v1239_v47  ;;  %v1255_v1 = vrot.slane %v1239_v47, %v1238_v42  ;;  %v2618_v2 = vpop.f32.mrb[27].mxu0  ;;  %v2863_v51 = vld [vmem:[%s3463_s28] sm:$0xff]  }
 0x1e5   : > { %2672 = vmatmul.mubr.msk.bf16.vlgmr.msra.gmra.mrb[28].mxu1 %vm1412_vm2, %v2861_v30  ;;  %v2868_v2 = vld [vmem:[%s3463_s28 + $0x28] sm:$0xff]  }
 0x1e6   : > { %2699 = vmatprep.mubr.msk.bf16.mxu1 %vm3106_vm0, %v3105_v28  ;;  %v1248_v3 = vcombine.high %v1246_v54, %v1246_v54  ;;  %v1269_v6 = vrot.slane %v1247_v60, %v1238_v42  ;;  %v1284_v7 = vrot.slane %v1255_v1, %v1283_v48  ;;  %v1277_v8 = vcombine.high %v1255_v1, %v1255_v1  ;;  %v2866_v60 = vld [vmem:[%s3463_s28 + $0x18] sm:$0xff]   ;;  %v2867_v1 = vld [vmem:[%s3463_s28 + $0x20] sm:$0xff]  }
 0x1e7   : > { %2678 = vmatpush3.bf16.msra.mxu0 %v1782_v0  ;;  %v1262_v9 = vrot.slane %v1246_v54, %v1238_v42  ;;  %2684 = vmatpush3.bf16.msra.mxu1 %v2863_v51  ;;  %v2865_v54 = vld [vmem:[%s3463_s28 + $0x10] sm:$0xff]  }
 0x1e8   : > { %v1288_v10 = vrot.slane %v1269_v6, %v1283_v48  ;;  %v1321_v11 = vadd.f32 %v1284_v7, %v3612_v63  ;;  %v1322_v12 = vadd.f32 %v1284_v7, %v3617_v5  ;;  %v1279_v13 = vcombine.high %v1269_v6, %v1269_v6  ;;  %2685 = vmatprep.subr.bf16.mxu1 %v3105_v28  ;;  %v2870_v6 = vld [vmem:[%s3463_s28 + $0x38] sm:$0xff]  }
 0x1e9   : > { %v1292_v14 = vrot.slane %v1277_v8, %v1283_v48  ;;  %v1276_v15 = vrot.slane %v1248_v3, %v1238_v42  ;;  %v1300_v16 = vrot.slane %v1262_v9, %v1283_v48  ;;  %v2869_v3 = vld [vmem:[%s3463_s28 + $0x30] sm:$0xff]   ;;  %v3729_v7 = vld [vmem:[%s656_s13] ss:$0 sm:$0xff] }
 0x1ea   : > { %2680 = vmatmul.mubr.msk.bf16.vlgmr.msra.gmra.mrb[40].mxu0 %vm1412_vm2, %v2862_v32  ;;  %v1323_v18 = vadd.f32 %v3609_v57, %v1288_v10  ;;  %v1324_v19 = vadd.f32 %v3614_v4, %v1288_v10  ;;  %v1296_v20 = vrot.slane %v1279_v13, %v1283_v48  ;;  %v2594_v57 = vpop.f32.mrb[10].mxu1  ;;  %v1278_v4 = vcombine.high %v1262_v9, %v1262_v9 }
 0x1eb   : > { %v1325_v25 = vadd.f32 %v1292_v14, %v3635_v21  ;;  %v3685_v29 = vadd.f32 %v1292_v14, %v3640_v27  ;;  %v1304_v30 = vrot.slane %v1276_v15, %v1283_v48  ;;  %v1280_v63 = vcombine.high %v1276_v15, %v1276_v15  ;;  %v1161_v27 = vpop.f32.mrb[11].mxu1 }
 0x1ec   : > { %v3688_v5 = vadd.f32 %v3629_v17, %v1296_v20  ;;  %v3691_v0 = vadd.f32 %v3637_v26, %v1296_v20  ;;  %v3693_v32 = vadd.f32 %v1300_v16, %v1158_v31  ;;  %v3699_v34 = vadd.f32 %v1300_v16, %v1161_v27  ;;  %v2597_v40 = vpop.f32.mrb[12].mxu1 }
 0x1ed   : > { %v3695_v33 = vadd.f32 %v2593_v24, %v1304_v30  ;;  %v3697_v21 = vadd.f32 %v2594_v57, %v1304_v30  ;;  %v1312_v35 = vrot.slane %v1280_v63, %v1283_v48  ;;  %v1308_v17 = vrot.slane %v1278_v4, %v1283_v48  ;;  %v1174_v26 = vpop.f32.mrb[13].mxu1  ;;  %v2864_v48 = vld [vmem:[%s3463_s28 + $0x8] sm:$0xff]  }
 0x1ee   : > { %v2598_v43 = vpop.f32.mrb[14].mxu1  ;;  %2686 = vmatpush3.bf16.msra.mxu1 %v2864_v48  ;;  %v1343_v8 = vadd.f32 %v3729_v7, %v1321_v11  ;;  %v1344_v9 = vadd.f32 %v3729_v7, %v1322_v12  ;;  %v1345_v20 = vadd.f32 %v3729_v7, %v1323_v18  ;;  %v1346_v24 = vadd.f32 %v3729_v7, %v1324_v19 }
 0x1ef   : > { %v3701_v41 = vadd.f32 %v2597_v40, %v1312_v35  ;;  %v3703_v42 = vadd.f32 %v1308_v17, %v1174_v26  ;;  %v3705_v46 = vadd.f32 %v2598_v43, %v1312_v35  ;;  %v1177_v47 = vpop.f32.mrb[15].mxu1  ;;  %2687 = vmatprep.subr.bf16.mxu1 %v3105_v28  ;;  %v1347_v4 = vadd.f32 %v3729_v7, %v1325_v25 }
 0x1f0   : > { %v3707_v49 = vadd.f32 %v1308_v17, %v1177_v47  ;;  %v1359_v10 = vmax.f32 %v1343_v8, 0.0  ;;  %v1360_v16 = vmax.f32 %v1344_v9, 0.0  ;;  %v1361_v57 = vmax.f32 %v1345_v20, 0.0 }
 0x1f1   : > { %v1362_v17 = vmax.f32 %v1346_v24, 0.0  ;;  %v1348_v40 = vadd.f32 %v3729_v7, %v3685_v29  ;;  %v1363_v51 = vmax.f32 %v1347_v4, 0.0  ;;  %v1349_v19 = vadd.f32 %v3729_v7, %v3688_v5 }
 0x1f2   : > { %2688 = vmatpush3.bf16.msra.mxu1 %v2865_v54 }
 0x1f3   : > { %2689 = vmatprep.subr.bf16.mxu1 %v3105_v28 }
 0x1f6   : > { %2690 = vmatpush3.bf16.msra.mxu1 %v2866_v60 }
 0x1f7   : > { %2691 = vmatprep.subr.bf16.mxu1 %v3105_v28 }
 0x1fa   : > { %2692 = vmatpush3.bf16.msra.mxu1 %v2867_v1 }
 0x1fb   : > { %2693 = vmatprep.subr.bf16.mxu1 %v3105_v28 }
 0x1fe   : > { %2694 = vmatpush3.bf16.msra.mxu1 %v2868_v2  ;;  %v1364_v2 = vmax.f32 %v1348_v40, 0.0 }
 0x1ff   : > { %2695 = vmatprep.subr.bf16.mxu1 %v3105_v28 }
 0x202   : > { %2696 = vmatpush3.bf16.msra.mxu1 %v2869_v3  ;;  %v1350_v3 = vadd.f32 %v3729_v7, %v3691_v0 }
 0x203   : > { %2697 = vmatprep.subr.bf16.mxu1 %v3105_v28 }
 0x206   : > { %2698 = vmatpush3.bf16.msra.mxu1 %v2870_v6 }
 0x295   : > { %v1454_v13 = vpop.f32.mrb[16].mxu1 }
 0x296   : > { %v1825_v14 = vmul.f32 %v1454_v13, %v1359_v10  ;;  %v2625_v15 = vpop.f32.mrb[17].mxu1 }
 0x297   : > { %v1457_v28 = vpop.f32.mrb[18].mxu1  ;;  %v1365_v15 = vmax.f32 %v1349_v19, 0.0  ;;  %v1353_v19 = vadd.f32 %v3729_v7, %v3695_v33 }
 0x298   : > { %v1826_v30 = vmul.f32 %v1457_v28, %v1360_v16  ;;  %v2626_v31 = vpop.f32.mrb[19].mxu1 }
 0x29a   : > { %v1841_v63 = vadd.f32 %v1826_v30, %v1825_v14  ;;  %v1366_v30 = vmax.f32 %v1350_v3, 0.0 }
 0x29b   : > { %v1506_v27 = vpop.f32.mrb[28].mxu0 }
 0x29c   : > { %v1842_v11 = vrot.slane %v1841_v63, 4  ;;  %v1827_v35 = vmul.f32 %v1506_v27, %v1361_v57  ;;  %v2633_v12 = vpop.f32.mrb[29].mxu0  ;;  %v1351_v57 = vadd.f32 %v3729_v7, %v3693_v32 }
 0x29d   : > { %v1509_v26 = vpop.f32.mrb[30].mxu0  ;;  %v1352_v12 = vadd.f32 %v3729_v7, %v3699_v34  ;;  %v1354_v34 = vadd.f32 %v3729_v7, %v3697_v21 }
 0x29e   : > { %v1843_v43 = vadd.f32 %v1842_v11, %v1841_v63  ;;  %v1828_v18 = vmul.f32 %v1509_v26, %v1362_v17  ;;  %v2634_v47 = vpop.f32.mrb[31].mxu0 }
 0x29f   : > { %v1370_v21 = vmax.f32 %v1354_v34, 0.0 }
 0x2a0   : > { %v1844_v48 = vrot.slane %v1843_v43, 2  ;;  %v1848_v54 = vadd.f32 %v1828_v18, %v1827_v35  ;;  %v1558_v60 = vpop.f32.mrb[20].mxu1 }
 0x2a1   : > { %v1829_v25 = vmul.f32 %v1558_v60, %v1363_v51  ;;  %v2641_v1 = vpop.f32.mrb[21].mxu1  ;;  %v1367_v51 = vmax.f32 %v1351_v57, 0.0 }
 0x2a2   : > { %v1845_v6 = vadd.f32 %v1844_v48, %v1843_v43  ;;  %v1849_v8 = vrot.slane %v1848_v54, 4  ;;  %v1561_v29 = vpop.f32.mrb[22].mxu1 }
 0x2a3   : > { %v1830_v9 = vmul.f32 %v1561_v29, %v1364_v2  ;;  %v2642_v10 = vpop.f32.mrb[23].mxu1  ;;  %v1368_v2 = vmax.f32 %v1352_v12, 0.0 }
 0x2a4   : > { %v1846_v13 = vrot.slane %v1845_v6, 1  ;;  %v1850_v14 = vadd.f32 %v1849_v8, %v1848_v54 }
 0x2a5   : > { %v1855_v16 = vadd.f32 %v1830_v9, %v1829_v25  ;;  %v1610_v20 = vpop.f32.mrb[32].mxu0 }
 0x2a6   : > { %v1851_v5 = vrot.slane %v1850_v14, 2  ;;  %v1831_v28 = vmul.f32 %v1610_v20, %v1365_v15  ;;  %v2649_v24 = vpop.f32.mrb[33].mxu0  ;;  %v1847_v0 = vadd.f32 %v1846_v13, %v1845_v6  ;;  %v1369_v20 = vmax.f32 %v1353_v19, 0.0 }
 0x2a7   : > { %v1856_v31 = vrot.slane %v1855_v16, 4  ;;  %v1613_v63 = vpop.f32.mrb[34].mxu0 }
 0x2a8   : > { %v1852_v4 = vadd.f32 %v1851_v5, %v1850_v14  ;;  %v1832_v27 = vmul.f32 %v1613_v63, %v1366_v30  ;;  %v2650_v11 = vpop.f32.mrb[35].mxu0  ;;  %v1897_v43 = vpack.c.bf16 %v1847_v0, %v1847_v0  ;;  %v1355_v5 = vadd.f32 %v3729_v7, %v3703_v42 }
 0x2a9   : > { %v1857_v35 = vadd.f32 %v1856_v31, %v1855_v16  ;;  %v1356_v0 = vadd.f32 %v3729_v7, %v3707_v49 }
 0x2aa   : > { %v1853_v17 = vrot.slane %v1852_v4, 1  ;;  %v1862_v40 = vadd.f32 %v1832_v27, %v1831_v28  ;;  %v1919_v8 = vunpack.c.l.b16 %v1897_v43  ;;  %v1371_v42 = vmax.f32 %v1355_v5, 0.0 }
 0x2ab   : > { %v1858_v26 = vrot.slane %v1857_v35, 2  ;;  %v1372_v49 = vmax.f32 %v1356_v0, 0.0 }
 0x2ac   : > { %v1854_v18 = vadd.f32 %v1853_v17, %v1852_v4  ;;  %v1863_v47 = vrot.slane %v1862_v40, 4 }
 0x2ad   : > { %v1859_v48 = vadd.f32 %v1858_v26, %v1857_v35  ;;  %v1662_v32 = vpop.f32.mrb[24].mxu1  ;;  %v1357_v26 = vadd.f32 %v3729_v7, %v3701_v41 }
 0x2ae   : > { %v1898_v54 = vpack.c.bf16 %v1854_v18, %v1854_v18  ;;  %v1864_v60 = vadd.f32 %v1863_v47, %v1862_v40  ;;  %v1833_v25 = vmul.f32 %v1662_v32, %v1367_v51  ;;  %v2657_v1 = vpop.f32.mrb[25].mxu1  ;;  %v1358_v32 = vadd.f32 %v3729_v7, %v3705_v46 }
 0x2af   : > { %v1860_v3 = vrot.slane %v1859_v48, 1  ;;  %v1665_v6 = vpop.f32.mrb[26].mxu1 }
 0x2b0   : > { %v1920_v29 = vunpack.c.l.b16 %v1898_v54  ;;  %v1865_v9 = vrot.slane %v1864_v60, 2  ;;  %v1834_v10 = vmul.f32 %v1665_v6, %v1368_v2  ;;  %v2658_v13 = vpop.f32.mrb[27].mxu1 }
 0x2b1   : > { %v1861_v14 = vadd.f32 %v1860_v3, %v1859_v48 }
 0x2b2   : > { %v1928_v33 = vsel %vm1927_vm3, %v1920_v29, %v1919_v8  ;;  %v1866_v15 = vadd.f32 %v1865_v9, %v1864_v60  ;;  %v1869_v16 = vadd.f32 %v1834_v10, %v1833_v25  ;;  %v1373_v8 = vmax.f32 %v1357_v26, 0.0 }
 0x2b3   : > { %v1899_v28 = vpack.c.bf16 %v1861_v14, %v1861_v14  ;;  %v1714_v24 = vpop.f32.mrb[36].mxu0 }
 0x2b4   : > { %v1867_v30 = vrot.slane %v1866_v15, 1  ;;  %v1870_v31 = vrot.slane %v1869_v16, 4  ;;  %v1835_v63 = vmul.f32 %v1714_v24, %v1369_v20  ;;  %v2665_v57 = vpop.f32.mrb[37].mxu0 }
 0x2b5   : > { %v1921_v4 = vunpack.c.l.b16 %v1899_v28  ;;  %v1717_v27 = vpop.f32.mrb[38].mxu0 }
 0x2b6   : > { %v1868_v11 = vadd.f32 %v1867_v30, %v1866_v15  ;;  %v1871_v35 = vadd.f32 %v1870_v31, %v1869_v16  ;;  %v1836_v12 = vmul.f32 %v1717_v27, %v1370_v21  ;;  %v2666_v17 = vpop.f32.mrb[39].mxu0  ;;  %v1374_v15 = vmax.f32 %v1358_v32, 0.0 }
 0x2b7   : > { %v1930_v40 = vsel %vm1929_vm4, %v1921_v4, %v1928_v33 }
 0x2b8   : > { %v1900_v43 = vpack.c.bf16 %v1868_v11, %v1868_v11  ;;  %v1872_v18 = vrot.slane %v1871_v35, 2  ;;  %v1876_v47 = vadd.f32 %v1836_v12, %v1835_v63  ;;  %v1766_v51 = vpop.f32.mrb[28].mxu1 }
 0x2b9   : > { %v1837_v19 = vmul.f32 %v1766_v51, %v1371_v42  ;;  %v2673_v48 = vpop.f32.mrb[29].mxu1 }
 0x2ba   : > { %v1922_v54 = vunpack.c.l.b16 %v1900_v43  ;;  %v1873_v60 = vadd.f32 %v1872_v18, %v1871_v35  ;;  %v1877_v25 = vrot.slane %v1876_v47, 4  ;;  %v1769_v1 = vpop.f32.mrb[30].mxu1 }
 0x2bb   : > { %v1838_v2 = vmul.f32 %v1769_v1, %v1372_v49  ;;  %v2674_v34 = vpop.f32.mrb[31].mxu1 }
 0x2bc   : > { %v1932_v3 = vsel %vm1931_vm5, %v1922_v54, %v1930_v40  ;;  %v1874_v41 = vrot.slane %v1873_v60, 1  ;;  %v1878_v6 = vadd.f32 %v1877_v25, %v1876_v47  ;;  %v2430_v25 = vld [vmem:[%s659_s27] ss:$0 sm:$0xff] }
 0x2bd   : > { %v1883_v29 = vadd.f32 %v1838_v2, %v1837_v19  ;;  %v1818_v9 = vpop.f32.mrb[40].mxu0 }
 0x2be   : > { %v1875_v10 = vadd.f32 %v1874_v41, %v1873_v60  ;;  %v1879_v13 = vrot.slane %v1878_v6, 2  ;;  %v1839_v14 = vmul.f32 %v1818_v9, %v1373_v8  ;;  %v2681_v33 = vpop.f32.mrb[41].mxu0  ;;  %v2038_v8 = vadd.f32 (!%p2439_p4), %v3484_v23, %v3481_v22 }
 0x2bf   : > { %v1884_v16 = vrot.slane %v1883_v29, 4  ;;  %v1821_v46 = vpop.f32.mrb[42].mxu0  ;;  %v2052_v9 = vadd.f32 (!%p2439_p4), %v3512_v39, %v3509_v38  ;;  %v2087_v22 = vadd.f32 (!%p2439_p4), %v3573_v62, %v3570_v61 }
 0x2c0   : > { %v1901_v7 = vpack.c.bf16 %v1875_v10, %v1875_v10  ;;  %v1880_v20 = vadd.f32 %v1879_v13, %v1878_v6  ;;  %v1840_v5 = vmul.f32 %v1821_v46, %v1374_v15  ;;  %v2682_v28 = vpop.f32.mrb[43].mxu0  ;;  %v2059_v10 = vadd.f32 (!%p2439_p4), %v3527_v45, %v3524_v44 }
 0x2c1   : > { %v1885_v24 = vadd.f32 %v1884_v16, %v1883_v29  ;;  %v2045_v29 = vadd.f32 (!%p2439_p4), %v3506_v37, %v3503_v36  ;;  %v2073_v13 = vadd.f32 (!%p2439_p4), %v3557_v56, %v3554_v55  ;;  %v2039_v23 = vrot.slane (!%p2439_p4), %v2038_v8, 4 }
 0x2c2   : > { %v1923_v21 = vunpack.c.l.b16 %v1901_v7  ;;  %v1881_v30 = vrot.slane %v1880_v20, 1  ;;  %v1890_v31 = vadd.f32 %v1840_v5, %v1839_v14  ;;  %v2080_v14 = vadd.f32 (!%p2439_p4), %v3565_v59, %v3562_v58 }
 0x2c3   : > { %v1886_v63 = vrot.slane %v1885_v24, 2  ;;  %v2046_v36 = vrot.slane (!%p2439_p4), %v2045_v29, 4  ;;  %v2053_v37 = vrot.slane (!%p2439_p4), %v2052_v9, 4  ;;  %v2060_v33 = vrot.slane (!%p2439_p4), %v2059_v10, 4 }
 0x2c4   : > { %v1934_v57 = vsel %vm1933_vm6, %v1923_v21, %v1932_v3  ;;  %v1882_v0 = vadd.f32 %v1881_v30, %v1880_v20  ;;  %v1891_v4 = vrot.slane %v1890_v31, 4  ;;  %v2074_v39 = vrot.slane (!%p2439_p4), %v2073_v13, 4 }
 0x2c5   : > { %v1887_v27 = vadd.f32 %v1886_v63, %v1885_v24  ;;  %v2081_v15 = vrot.slane (!%p2439_p4), %v2080_v14, 4  ;;  %v2088_v44 = vrot.slane (!%p2439_p4), %v2087_v22, 4  ;;  %v2040_v45 = vadd.f32 (!%p2439_p4), %v2039_v23, %v2038_v8 }
 0x2c6   : > { %v1902_v11 = vpack.c.bf16 %v1882_v0, %v1882_v0  ;;  %v1892_v35 = vadd.f32 %v1891_v4, %v1890_v31  ;;  %v2047_v16 = vadd.f32 (!%p2439_p4), %v2046_v36, %v2045_v29  ;;  %v2075_v55 = vadd.f32 (!%p2439_p4), %v2074_v39, %v2073_v13 }
 0x2c7   : > { %v1888_v12 = vrot.slane %v1887_v27, 1  ;;  %v2082_v56 = vadd.f32 (!%p2439_p4), %v2081_v15, %v2080_v14  ;;  %v2089_v7 = vadd.f32 (!%p2439_p4), %v2088_v44, %v2087_v22  ;;  %v2041_v58 = vrot.slane (!%p2439_p4), %v2040_v45, 2 }
 0x2c8   : > { %v1924_v17 = vunpack.c.l.b16 %v1902_v11  ;;  %v1893_v40 = vrot.slane %v1892_v35, 2  ;;  %v2048_v59 = vrot.slane (!%p2439_p4), %v2047_v16, 2  ;;  %v2076_v5 = vrot.slane (!%p2439_p4), %v2075_v55, 2 }
 0x2c9   : > { %v1889_v42 = vadd.f32 %v1888_v12, %v1887_v27  ;;  %v2083_v28 = vrot.slane (!%p2439_p4), %v2082_v56, 2  ;;  %v2090_v24 = vrot.slane (!%p2439_p4), %v2089_v7, 2  ;;  %v2042_v21 = vadd.f32 (!%p2439_p4), %v2041_v58, %v2040_v45 }
 0x2ca   : > { %v1894_v26 = vadd.f32 %v1893_v40, %v1892_v35  ;;  %v1936_v43 = vsel %vm1935_vm7, %v1924_v17, %v1934_v57  ;;  %v2049_v30 = vadd.f32 (!%p2439_p4), %v2048_v59, %v2047_v16  ;;  %v2077_v0 = vadd.f32 (!%p2439_p4), %v2076_v5, %v2075_v55 }
 0x2cb   : > { %v1903_v18 = vpack.c.bf16 %v1889_v42, %v1889_v42  ;;  %v2084_v4 = vadd.f32 (!%p2439_p4), %v2083_v28, %v2082_v56  ;;  %v2091_v27 = vadd.f32 (!%p2439_p4), %v2090_v24, %v2089_v7  ;;  %v2043_v11 = vrot.slane (!%p2439_p4), %v2042_v21, 1 }
 0x2cc   : > { %v1895_v47 = vrot.slane %v1894_v26, 1  ;;  %v2050_v35 = vrot.slane (!%p2439_p4), %v2049_v30, 1  ;;  %v2078_v42 = vrot.slane (!%p2439_p4), %v2077_v0, 1 }
 0x2cd   : > { %v1925_v51 = vunpack.c.l.b16 %v1903_v18 }
 0x2ce   : > { %v1896_v19 = vadd.f32 %v1895_v47, %v1894_v26  ;;  %v2085_v26 = vrot.slane (!%p2439_p4), %v2084_v4, 1  ;;  %v2044_v47 = vadd.f32 (!%p2439_p4), %v2043_v11, %v2042_v21 }
 0x2cf   : > { %v1938_v48 = vsel %vm1937_vm8, %v1925_v51, %v1936_v43  ;;  %v2092_v43 = vrot.slane (!%p2439_p4), %v2091_v27, 1  ;;  %v2051_v51 = vadd.f32 (!%p2439_p4), %v2050_v35, %v2049_v30 }
 0x2d0   : > { %v1904_v49 = vpack.c.bf16 %v1896_v19, %v1896_v19 }
 0x2d2   : > { %v1926_v32 = vunpack.c.l.b16 %v1904_v49 }
 0x2d4   : > { %v1940_v54 = vsel %vm1939_vm9, %v1926_v32, %v1938_v48 }
 0x2d5   : > { %v1941_v60 = vpack.c.b16 %v1940_v54, %v1940_v54  ;;  %v2079_v54 = vadd.f32 (!%p2439_p4), %v2078_v42, %v2077_v0 }
 0x2d7   : > { %2700 = vmatmul.mubr.bf16.vlgmr.msra.gmra.mrb[32].mxu1 %v1941_v60  ;;  %v2086_v60 = vadd.f32 (!%p2439_p4), %v2085_v26, %v2084_v4 }
 0x3a9   : > { %2037 = sbr.rel (%p2439_p4) target bundleno = 967 (0x3c7), region = 117 }
 0x3aa   : > { %v2025_v1 = vpop.f32.mrb[32].mxu1 }
 0x3ab   : > { %v2026_v2 = vadd.f32 %v2430_v25, %v2025_v1  ;;  %v2701_v34 = vpop.f32.mrb[33].mxu1  ;;  %v2093_v25 = vadd.f32 (!%p2439_p4), %v2092_v43, %v2091_v27 }
 0x3ac   : > { %v2028_v3 = vpop.f32.mrb[34].mxu1 }
 0x3ad   : > { %v2032_v41 = vadd.f32 %v2026_v2, %v3537_v50  ;;  %v2702_v6 = vpop.f32.mrb[35].mxu1  ;;  %v2066_v50 = vadd.f32 (!%p2439_p4), %v3549_v53, %v3546_v52  ;;  %v2054_v52 = vadd.f32 (!%p2439_p4), %v2053_v37, %v2052_v9  ;;  %v2061_v53 = vadd.f32 (!%p2439_p4), %v2060_v33, %v2059_v10 }
 0x3af   : > { %2033 = vst [vmem:[#allocation2] sm:$0xff] %v2032_v41  ;;  %v2067_v38 = vrot.slane (!%p2439_p4), %v2066_v50, 4  ;;  %v2055_v20 = vrot.slane (!%p2439_p4), %v2054_v52, 2  ;;  %v2062_v61 = vrot.slane (!%p2439_p4), %v2061_v53, 2 }
 0x3b1   : > { %v2068_v46 = vadd.f32 %v2067_v38, %v2066_v50  ;;  %v2056_v31 = vadd.f32 %v2055_v20, %v2054_v52  ;;  %v2063_v63 = vadd.f32 %v2062_v61, %v2061_v53 }
 0x3b3   : > { %v2069_v62 = vrot.slane %v2068_v46, 2  ;;  %v2057_v12 = vrot.slane %v2056_v31, 1  ;;  %v2064_v17 = vrot.slane %v2063_v63, 1 }
 0x3b5   : > { %v2070_v57 = vadd.f32 %v2069_v62, %v2068_v46  ;;  %v2058_v19 = vadd.f32 %v2057_v12, %v2056_v31  ;;  %v2065_v48 = vadd.f32 %v2064_v17, %v2063_v63 }
 0x3b6   : > { %v2094_v18 = vld [vmem:[#allocation2] sm:$0xff] }
 0x3b7   : > { %v2071_v40 = vrot.slane %v2070_v57, 1  ;;  %v2095_v32 = vmul.f32 12.0, %v2094_v18 }
 0x3b9   : > { %v2072_v49 = vadd.f32 %v2071_v40, %v2070_v57  ;;  %v2097_v1 = vrot.slane %v2095_v32, 1  ;;  %v2098_v2 = vrot.slane %v2095_v32, 2  ;;  %v2099_v34 = vrot.slane %v2095_v32, 3 }
 0x3ba   : > { %v2100_v3 = vrot.slane %v2095_v32, 4  ;;  %v2101_v41 = vrot.slane %v2095_v32, 5  ;;  %v2102_v6 = vrot.slane %v2095_v32, 6  ;;  %v2103_v8 = vrot.slane %v2095_v32, 7 }
 0x3bb   : > { %v2112_v29 = vadd.f32 %v2095_v32, %v2044_v47  ;;  %v2113_v9 = vadd.f32 %v2097_v1, %v2051_v51  ;;  %v2114_v10 = vadd.f32 %v2098_v2, %v2058_v19  ;;  %v2115_v50 = vadd.f32 %v2099_v34, %v2065_v48 }
 0x3bc   : > { %v2116_v13 = vadd.f32 %v2100_v3, %v2072_v49  ;;  %v2117_v14 = vadd.f32 %v2101_v41, %v2079_v54  ;;  %v2118_v22 = vadd.f32 %v2102_v6, %v2086_v60  ;;  %v2119_v23 = vadd.f32 %v2103_v8, %v2093_v25 }
 0x3bd   : > { %v2128_v36 = vrot.slane %v2113_v9, 7  ;;  %v2130_v37 = vrot.slane %v2114_v10, 6  ;;  %v2132_v33 = vrot.slane %v2115_v50, 5 }
 0x3be   : > { %v2134_v38 = vrot.slane %v2116_v13, 4  ;;  %v2136_v15 = vrot.slane %v2117_v14, 3  ;;  %v2138_v45 = vrot.slane %v2118_v22, 2  ;;  %v2140_v52 = vrot.slane %v2119_v23, 1 }
 0x3bf   : > { %v2129_v39 = vsel %vm1927_vm3, %v2128_v36, %v2112_v29 }
 0x3c0   : > { %v2131_v44 = vsel %vm1929_vm4, %v2130_v37, %v2129_v39 }
 0x3c1   : > { %v2133_v16 = vsel %vm1931_vm5, %v2132_v33, %v2131_v44 }
 0x3c2   : > { %v2135_v53 = vsel %vm1933_vm6, %v2134_v38, %v2133_v16 }
 0x3c3   : > { %v2137_v46 = vsel %vm1935_vm7, %v2136_v15, %v2135_v53 }
 0x3c4   : > { %v2139_v55 = vsel %vm1937_vm8, %v2138_v45, %v2137_v46 }
 0x3c5   : > { %v2141_v56 = vsel %vm1939_vm9, %v2140_v52, %v2139_v55 }
 0x3c6   : > { %2143 = vst [vmem:[%s635_s26] sm:$0xff] %v2141_v56 }
 0x3c7 PF: > { %s3949_s17 = sld [smem:[#allocation27_spill]]  ;;  %s2441_s27 = sshll.u32 %s3085_s18, 7 }
 0x3c8   : > { %s3950_s22 = sld [smem:[#allocation37_spill]]  ;;  %s2158_s29 = sshll.u32 %s635_s26, 4  ;;  %s2159_s29 = int_to_ptr.vmem [resolvable:$true] %s2158_s29 }
 0x3c9   : > { %s3951_s0 = sand.u32 1, %s3053_s10   ;;  %s2955_s24 = scalar_lea.vmem %s2159_s29, 128 }
 0x3ca   : > { %s2145_s11 = scalar_lea.sflag [#allocation6], %s3951_s0  ;;  %p2956_p5 = scmp.ne.s32.totalorder %s2159_s29, %s2955_s24 }
 0x3cb   : > { %s3108_s12 = smov [#allocation10]  }
 0x3cc   : > { %s2959_s9 = sshll.u32 %s3108_s12, 4  ;;  %s2960_s9 = int_to_ptr.vmem [resolvable:$false] %s2959_s9 }
 0x3cd   : > { %p3952_p13 = scmp.ne.s32.totalorder %s3949_s17, 0  ;;  %s2961_s16 = scalar_lea.vmem %s2960_s9, 256 }
 0x3ce   : > { %s3801_s4 = scalar_lea.hbm %s3950_s22, %s2441_s27  ;;  %p2962_p1 = scmp.lt.s32.totalorder %s2159_s29, %s2960_s9 }
 0x3cf   : > { %p2957_p0 = pnand %p2956_p5, %p3952_p13  ;;  %p2963_p6 = scmp.lt.s32.totalorder %s2961_s16, %s2955_s24 }
 0x3d1   : > { %p2958_p9 = pneg %p2957_p0  ;;  %p2964_p3 = por %p2963_p6, %p2962_p1 }
 0x3d3   : > { %p2965_p2 = pnand %p2964_p3, %p2958_p9 }
 0x3d5   : > { %2968 = shalt.err (!%p2965_p2)
}
 0x3d6   : > { %s2969_s18 = scalar_lea.hbm %s3801_s4, 128  ;;  %s2973_s25 = scalar_lea.hbm %s3950_s22, 512 }
 0x3d7   : > { %p2970_p8 = scmp.ne.s32.totalorder %s3801_s4, %s2969_s18  ;;  %p2974_p11 = scmp.lt.u32.totalorder %s3801_s4, %s3950_s22 }
 0x3d8   : > { %p2975_p12 = scmp.lt.u32.totalorder %s2973_s25, %s2969_s18  ;;  %p2977_p5 = scmp.lt.u32.totalorder %s2969_s18, %s3801_s4 }
 0x3d9   : > { %p2971_p10 = pnand %p2970_p8, %p3952_p13 }
 0x3da   : > { %p2976_p4 = por %p2975_p12, %p2974_p11 }
 0x3db   : > { %p2972_p7 = pneg %p2971_p10 }
 0x3dc   : > { %p2978_p0 = por %p2977_p5, %p2976_p4 }
 0x3de   : > { %p2979_p9 = pnand %p2978_p0, %p2972_p7 }
 0x3e0   : > { %2982 = shalt.err (!%p2979_p9)
}
 0x3e1   : > { %2710 = dma.vmem_to_hbm [thread:$0]  (%p3952_p13), %s2159_s29, 128, %s3801_s4, %s2145_s11  }
 0x3e2 PF: > { %s3953_s26 = sld [smem:[#allocation21_spill]]  ;;  %s3954_s3 = sld [smem:[#allocation14_spill]] }
 0x3e3   : > { %s3955_s7 = sld [smem:[#allocation28_spill]] }
 0x3e8   : > { %p2716_p1 = scmp.ge.s32.totalorder %s3953_s26, 2  ;;  %s2170_s30 = sand.u32 1, %s3954_s3  }
 0x3e9   : > { %p3956_p6 = scmp.ne.s32.totalorder %s3955_s7, 0  ;;  %s2171_s14 = scalar_lea.sflag [#allocation6], %s2170_s30 }
 0x3eb   : > { %p2713_p3 = pnand %p2716_p1, %p3956_p6 }
 0x3ed   : > { %3044 = dma.done.wait (!%p2713_p3), %s2171_s14, 128  }
 0x3ee   : > { %3046 = vsyncadd (!%p2713_p3), %s2171_s14, 4294967168  ;;  %s28_s21 = sadd.s32 1, %s3953_s26   ;;  %s3958_s13 = sld [smem:[#allocation15_spill]] }
 0x3ef   : > { %p3829_p2 = scmp.ge.s32.totalorder %s28_s21, 10   ;;  %s3959_s11 = sld [smem:[#allocation26_spill]] }
 0x3f0   : > { %s3960_s12 = sld [smem:[#allocation16_spill]]  ;;  %s3961_s5 = sld [smem:[#allocation17_spill]] }
 0x3f1   : > { %s3962_s14 = sld [smem:[#allocation24_spill]]  ;;  %s3963_s15 = sld [smem:[#allocation18_spill]] }
 0x3f2   : > { %s3964_s16 = sld [smem:[#allocation25_spill]]  ;;  %s3965_s17 = sld [smem:[#allocation19_spill]] }
 0x3f3   : > { %s3966_s18 = sld [smem:[#allocation20_spill]]  ;;  %s3967_s19 = sld [smem:[#allocation22_spill]] }
 0x3f4   : > { %s3968_s20 = sld [smem:[#allocation23_spill]]  ;;  %s3969_s30 = smov %s3053_s10 }
 0x3f5   : > { %s3970_s10 = smov %s3958_s13  ;;  %27 = sbr.rel (!%p3829_p2) target bundleno = 22 (0x16), region = 197 }
 0x3f6   : > { %s3971_s13 = smov %s3961_s5 }
 0x3fc   :  { %2176 = vsyncpa [#allocation5], 1 }
 0x3fd   :  { %2178 = vsyncpa [#allocation5 + $0x1], 1 }
 0x3fe   :  { %2179 = vsyncpa [#allocation8], 1 }
 0x3ff   :  { %2181 = vsyncpa [#allocation8 + $0x1], 1 }
 0x400   :  { %2182 = vsyncpa [#allocation6], 1 }
 0x401   :  { %2184 = vsyncpa [#allocation6 + $0x1], 1 }

</bundles_post_ra>
